<compile_context>
chip_gen: v7x
topology: tpu7x:2x2x1
jax: 0.10.0
libtpu: 0.0.40
codegen_flags: <defaults>
</compile_context>

<pallas_src>
import numpy as np
import jax
import jax.numpy as jnp
from jax import lax
from jax.experimental import pallas as pl
from jax.experimental.pallas import tpu as pltpu


def _vspec():
    # whole array resident in VMEM (shapes here are tiny, no blocking needed)
    return pl.BlockSpec(memory_space=pltpu.MemorySpace.VMEM)


# --------------------- fused decoder kernel: fc1+BN -> multi-layer LSTM ----------------
def _make_decoder_kernel(depth, hidden, in_dims, t_total, batch):
    H = hidden
    B = batch

    def kernel(x_ref, y_ref, len_ref, wfc1_ref, bfc1_ref, gamma_ref, beta_ref, *rest):
        w_refs = rest[0:depth]                        # combined [(E_l+H), 4H]
        b_refs = rest[depth:2 * depth]                # [1, 4H]  (= b_ih + b_hh)
        out_ref = rest[2 * depth]                     # [T+1, B, H] time-major
        zin_scr = rest[2 * depth + 1: 2 * depth + 1 + depth]   # per-layer [B, E_l+H]

        # ---- fc1 + BatchNorm1d (train mode: batch stats, biased variance, eps=1e-5) ----
        h0 = (jnp.dot(x_ref[...], wfc1_ref[...], preferred_element_type=jnp.float32)
              + bfc1_ref[...])
        mean = jnp.mean(h0, axis=0, keepdims=True)
        var = jnp.mean((h0 - mean) ** 2, axis=0, keepdims=True)
        x_bn = (h0 - mean) * lax.rsqrt(var + 1e-5) * gamma_ref[...] + beta_ref[...]

        # ---- loop-invariant hoists: weights, bias broadcast, gate lane mask ----
        w_vals = [w_refs[l][...] for l in range(depth)]
        b_vals = [jnp.broadcast_to(b_refs[l][...], (B, 4 * H)) for l in range(depth)]
        lane = lax.broadcasted_iota(jnp.int32, (B, 4 * H), 1)
        is_g_gate = (lane >= 2 * H) & (lane < 3 * H)      # PyTorch gate order: i, f, g, o

        def cell(layer_in, hs, cs):
            new_hs, new_cs = [], []
            cur = layer_in
            for l in range(depth):
                e_l = in_dims[l]
                # stage [cur | h] into VMEM scratch -> single fused matmul per layer
                zin_scr[l][:, 0:e_l] = cur
                zin_scr[l][:, e_l:e_l + H] = hs[l]
                gates = (jnp.dot(zin_scr[l][...], w_vals[l],
                                 preferred_element_type=jnp.float32) + b_vals[l])
                # full-width activation pass (EUP) + single select, then slice gates
                act = jnp.where(is_g_gate, jnp.tanh(gates), jax.nn.sigmoid(gates))
                i_g = act[:, 0 * H:1 * H]
                f_g = act[:, 1 * H:2 * H]
                g_g = act[:, 2 * H:3 * H]
                o_g = act[:, 3 * H:4 * H]
                c_new = f_g * cs[l] + i_g * g_g
                h_new = o_g * jnp.tanh(c_new)
                new_hs.append(h_new)
                new_cs.append(c_new)
                cur = h_new
            return cur, tuple(new_hs), tuple(new_cs)

        hs = tuple(jnp.zeros((B, H), jnp.float32) for _ in range(depth))
        cs = hs
        # Time loop fully unrolled (static T+1 steps): all loads/stores use static
        # indices and the scheduler gets cross-iteration visibility (perf feedback).
        for t in range(t_total):
            layer_in = x_bn if t == 0 else y_ref[t - 1]   # t=0: encoder feature
            top, hs, cs = cell(layer_in, hs, cs)
            out_ref[t] = top

        # pad_packed_sequence zero-padding: one vectorized masked pass over the block
        lens = len_ref[...]                                         # [B, 1] int32
        t_idx = lax.broadcasted_iota(jnp.int32, (t_total, B, 1), 0)
        out_ref[...] = jnp.where(t_idx < lens[None, :, :], out_ref[...], 0.0)

    return kernel


# --------------------------------------- wrapper ---------------------------------------
def lstm_decoder_forward(params, x, y_tokens, lengths_np):
    B = x.shape[0]
    E = params["w_fc1"].shape[1]
    H = params["lstm"][0]["w_cat"].shape[1] // 4
    depth = len(params["lstm"])
    vocab = params["w_fc2"].shape[1]
    T = y_tokens.shape[1]
    t_total = T + 1
    in_dims = [E] + [H] * (depth - 1)

    # embedding gather straight into time-major layout [T, B, E] (gather glue in XLA)
    y_emb_tm = jnp.take(params["embedding"], y_tokens.T, axis=0)

    lengths = jnp.asarray(lengths_np, jnp.int32).reshape(B, 1)

    inputs = [x, y_emb_tm, lengths,
              params["w_fc1"], params["b_fc1"], params["bn_gamma"], params["bn_beta"]]
    inputs += [lp["w_cat"] for lp in params["lstm"]]
    inputs += [lp["b"] for lp in params["lstm"]]

    out_tm = pl.pallas_call(
        _make_decoder_kernel(depth, H, in_dims, t_total, B),
        out_shape=jax.ShapeDtypeStruct((t_total, B, H), jnp.float32),
        in_specs=[_vspec()] * len(inputs),
        out_specs=_vspec(),
        scratch_shapes=[pltpu.VMEM((B, in_dims[l] + H), jnp.float32)
                        for l in range(depth)],
    )(*inputs)

    # pad_packed_sequence(batch_first=True) -> [B, max(lengths), H]
    t_out = int(np.max(np.asarray(lengths_np)))
    output = jnp.transpose(out_tm, (1, 0, 2))[:, :t_out, :]

    # attention=False path: fc2 is applied to zeros_like(output), which is exactly
    # a broadcast of fc2's bias -> dead matmul + DMA + kernel launch removed.
    preds = jnp.broadcast_to(params["b_fc2"], (B, t_out, vocab))
    return preds, output


# ------------------------------ deterministic parameter init ---------------------------
def init_params(key, encoder_dim, embedding_dim, vocab_size, decoder_dim, depth):
    keys = iter(jax.random.split(key, 8 + 4 * depth))
    s = 0.1

    def rnd(shape):
        return s * jax.random.normal(next(keys), shape, jnp.float32)

    params = {
        "w_fc1": rnd((encoder_dim, embedding_dim)),
        "b_fc1": rnd((1, embedding_dim)),
        "bn_gamma": jnp.ones((1, embedding_dim), jnp.float32) + rnd((1, embedding_dim)),
        "bn_beta": rnd((1, embedding_dim)),
        "embedding": rnd((vocab_size, embedding_dim)),
        "w_fc2": rnd((decoder_dim, vocab_size)),
        "b_fc2": rnd((1, vocab_size)),
        "lstm": [],
    }
    for l in range(depth):
        in_dim = embedding_dim if l == 0 else decoder_dim
        params["lstm"].append({
            # pre-concatenated [weight_ih^T ; weight_hh^T] -> one matmul / layer / step
            "w_cat": rnd((in_dim + decoder_dim, 4 * decoder_dim)),
            "b": rnd((1, 4 * decoder_dim)),               # b_ih + b_hh combined
        })
    return params


if __name__ == "__main__":
    encoder_dim, embedding_dim, vocab_size = 32, 16, 50
    decoder_dim, decoder_depth = 32, 2
    B, T = 4, 7                                   # sequence fed to the LSTM: T+1 = 8 steps

    key = jax.random.PRNGKey(0)
    kp, kx, ky = jax.random.split(key, 3)
    params = init_params(kp, encoder_dim, embedding_dim, vocab_size,
                         decoder_dim, decoder_depth)

    x = jax.random.normal(kx, (B, encoder_dim), jnp.float32)
    y = jax.random.randint(ky, (B, T), 0, vocab_size, dtype=jnp.int32)
    lengths = np.array([8, 7, 6, 5], dtype=np.int32)   # sorted descending, <= T+1

    preds, lstm_out = lstm_decoder_forward(params, x, y, lengths)
    preds, lstm_out = jax.block_until_ready((preds, lstm_out))

    # sanity: attention disabled -> predictions == fc2 bias broadcast
    assert preds.shape == (B, int(lengths.max()), vocab_size)
    assert np.allclose(np.asarray(preds),
                       np.broadcast_to(np.asarray(params["b_fc2"]), preds.shape),
                       atol=1e-6)
    lo = np.asarray(lstm_out)
    assert np.all(np.isfinite(lo))
    # pad_packed zero-padding check: sample 3 has length 5 -> steps 5.. are zero
    assert np.allclose(lo[3, 5:, :], 0.0)
    # step-0 outputs (encoder feature through the LSTM) are non-trivial
    assert np.abs(lo[:, 0, :]).sum() > 0

    print("KERNEL_OK")
</pallas_src>

<mosaic_0001>
module attributes {stable_mosaic.version = 11 : i64} {
  func.func @kernel(%arg0: memref<4x32xf32, #tpu.memory_space<vmem>>, %arg1: memref<7x4x16xf32, #tpu.memory_space<vmem>>, %arg2: memref<4x1xi32, #tpu.memory_space<vmem>>, %arg3: memref<32x16xf32, #tpu.memory_space<vmem>>, %arg4: memref<1x16xf32, #tpu.memory_space<vmem>>, %arg5: memref<1x16xf32, #tpu.memory_space<vmem>>, %arg6: memref<1x16xf32, #tpu.memory_space<vmem>>, %arg7: memref<48x128xf32, #tpu.memory_space<vmem>>, %arg8: memref<64x128xf32, #tpu.memory_space<vmem>>, %arg9: memref<1x128xf32, #tpu.memory_space<vmem>>, %arg10: memref<1x128xf32, #tpu.memory_space<vmem>>, %arg11: memref<8x4x32xf32, #tpu.memory_space<vmem>>, %arg12: memref<4x48xf32, #tpu.memory_space<vmem>>, %arg13: memref<4x64xf32, #tpu.memory_space<vmem>>) attributes {dimension_semantics = [], scalar_prefetch = 0 : i64, scratch_operands = 2 : i64, tpu.core_type = #tpu.core_type<tc>} {
    %c0 = arith.constant 0 : index
    %c0_0 = arith.constant 0 : index
    %0 = vector.load %arg0[%c0, %c0_0] : memref<4x32xf32, #tpu.memory_space<vmem>>, vector<4x32xf32>
    %c0_1 = arith.constant 0 : index
    %c0_2 = arith.constant 0 : index
    %1 = vector.load %arg3[%c0_1, %c0_2] : memref<32x16xf32, #tpu.memory_space<vmem>>, vector<32x16xf32>
    %cst = arith.constant dense<0.000000e+00> : vector<4x16xf32>
    %2 = tpu.matmul %0, %1, %cst {dimension_numbers = #tpu.dot_dimension_numbers<[1], [0], [0], [1], [0, 0, 1, 1], [], []>} : vector<4x32xf32>, vector<32x16xf32>, vector<4x16xf32> -> vector<4x16xf32>
    %c0_3 = arith.constant 0 : index
    %c0_4 = arith.constant 0 : index
    %3 = vector.load %arg4[%c0_3, %c0_4] : memref<1x16xf32, #tpu.memory_space<vmem>>, vector<1x16xf32>
    %4 = vector.broadcast %3 : vector<1x16xf32> to vector<4x16xf32>
    %5 = arith.addf %2, %4 : vector<4x16xf32>
    %cst_5 = arith.constant dense<0.000000e+00> : vector<16xf32>
    %6 = vector.multi_reduction <add>, %5, %cst_5 [0] : vector<4x16xf32> to vector<16xf32>
    %7 = vector.shape_cast %6 : vector<16xf32> to vector<1x16xf32>
    %cst_6 = arith.constant 4.000000e+00 : f32
    %8 = vector.broadcast %cst_6 : f32 to vector<1x16xf32>
    %9 = arith.divf %7, %8 : vector<1x16xf32>
    %10 = vector.broadcast %9 : vector<1x16xf32> to vector<4x16xf32>
    %11 = arith.subf %5, %10 : vector<4x16xf32>
    %12 = arith.mulf %11, %11 : vector<4x16xf32>
    %cst_7 = arith.constant dense<0.000000e+00> : vector<16xf32>
    %13 = vector.multi_reduction <add>, %12, %cst_7 [0] : vector<4x16xf32> to vector<16xf32>
    %14 = vector.shape_cast %13 : vector<16xf32> to vector<1x16xf32>
    %cst_8 = arith.constant 4.000000e+00 : f32
    %15 = vector.broadcast %cst_8 : f32 to vector<1x16xf32>
    %16 = arith.divf %14, %15 : vector<1x16xf32>
    %17 = vector.broadcast %9 : vector<1x16xf32> to vector<4x16xf32>
    %18 = arith.subf %5, %17 : vector<4x16xf32>
    %cst_9 = arith.constant 9.99999974E-6 : f32
    %19 = vector.broadcast %cst_9 : f32 to vector<1x16xf32>
    %20 = arith.addf %16, %19 : vector<1x16xf32>
    %21 = math.rsqrt %20 : vector<1x16xf32>
    %22 = vector.broadcast %21 : vector<1x16xf32> to vector<4x16xf32>
    %23 = arith.mulf %18, %22 : vector<4x16xf32>
    %c0_10 = arith.constant 0 : index
    %c0_11 = arith.constant 0 : index
    %24 = vector.load %arg5[%c0_10, %c0_11] : memref<1x16xf32, #tpu.memory_space<vmem>>, vector<1x16xf32>
    %25 = vector.broadcast %24 : vector<1x16xf32> to vector<4x16xf32>
    %26 = arith.mulf %23, %25 : vector<4x16xf32>
    %c0_12 = arith.constant 0 : index
    %c0_13 = arith.constant 0 : index
    %27 = vector.load %arg6[%c0_12, %c0_13] : memref<1x16xf32, #tpu.memory_space<vmem>>, vector<1x16xf32>
    %28 = vector.broadcast %27 : vector<1x16xf32> to vector<4x16xf32>
    %29 = arith.addf %26, %28 : vector<4x16xf32>
    %c0_14 = arith.constant 0 : index
    %c0_15 = arith.constant 0 : index
    %30 = vector.load %arg7[%c0_14, %c0_15] : memref<48x128xf32, #tpu.memory_space<vmem>>, vector<48x128xf32>
    %c0_16 = arith.constant 0 : index
    %c0_17 = arith.constant 0 : index
    %31 = vector.load %arg8[%c0_16, %c0_17] : memref<64x128xf32, #tpu.memory_space<vmem>>, vector<64x128xf32>
    %c0_18 = arith.constant 0 : index
    %c0_19 = arith.constant 0 : index
    %32 = vector.load %arg9[%c0_18, %c0_19] : memref<1x128xf32, #tpu.memory_space<vmem>>, vector<1x128xf32>
    %33 = vector.shape_cast %32 : vector<1x128xf32> to vector<1x128xf32>
    %34 = vector.broadcast %33 : vector<1x128xf32> to vector<4x128xf32>
    %c0_20 = arith.constant 0 : index
    %c0_21 = arith.constant 0 : index
    %35 = vector.load %arg10[%c0_20, %c0_21] : memref<1x128xf32, #tpu.memory_space<vmem>>, vector<1x128xf32>
    %36 = vector.shape_cast %35 : vector<1x128xf32> to vector<1x128xf32>
    %37 = vector.broadcast %36 : vector<1x128xf32> to vector<4x128xf32>
    %38 = tpu.iota {dimensions = array<i32: 1>} : vector<4x128xi32>
    %c64_i32 = arith.constant 64 : i32
    %39 = vector.broadcast %c64_i32 : i32 to vector<4x128xi32>
    %40 = arith.cmpi sge, %38, %39 : vector<4x128xi32>
    %c96_i32 = arith.constant 96 : i32
    %41 = vector.broadcast %c96_i32 : i32 to vector<4x128xi32>
    %42 = arith.cmpi slt, %38, %41 : vector<4x128xi32>
    %43 = arith.andi %40, %42 : vector<4x128xi1>
    %cst_22 = arith.constant 0.000000e+00 : f32
    %44 = vector.broadcast %cst_22 : f32 to vector<4x32xf32>
    %cst_23 = arith.constant 0.000000e+00 : f32
    %45 = vector.broadcast %cst_23 : f32 to vector<4x32xf32>
    %c0_24 = arith.constant 0 : index
    %c0_25 = arith.constant 0 : index
    %46 = vector.load %arg12[%c0_24, %c0_25] : memref<4x48xf32, #tpu.memory_space<vmem>>, vector<4x16xf32>
    tpu.vector_store %arg12[%c0_24, %c0_25], %29 {strides = array<i32>} : memref<4x48xf32, #tpu.memory_space<vmem>>, vector<4x16xf32>,
    %c0_26 = arith.constant 0 : index
    %c16 = arith.constant 16 : index
    %47 = vector.load %arg12[%c0_26, %c16] : memref<4x48xf32, #tpu.memory_space<vmem>>, vector<4x32xf32>
    tpu.vector_store %arg12[%c0_26, %c16], %44 {strides = array<i32>} : memref<4x48xf32, #tpu.memory_space<vmem>>, vector<4x32xf32>,
    %c0_27 = arith.constant 0 : index
    %c0_28 = arith.constant 0 : index
    %48 = vector.load %arg12[%c0_27, %c0_28] : memref<4x48xf32, #tpu.memory_space<vmem>>, vector<4x48xf32>
    %cst_29 = arith.constant dense<0.000000e+00> : vector<4x128xf32>
    %49 = tpu.matmul %48, %30, %cst_29 {dimension_numbers = #tpu.dot_dimension_numbers<[1], [0], [0], [1], [0, 0, 1, 1], [], []>} : vector<4x48xf32>, vector<48x128xf32>, vector<4x128xf32> -> vector<4x128xf32>
    %50 = arith.addf %49, %34 : vector<4x128xf32>
    %51 = math.tanh %50 : vector<4x128xf32>
    %52 = arith.negf %50 : vector<4x128xf32>
    %53 = math.exp %52 : vector<4x128xf32>
    %cst_30 = arith.constant 1.000000e+00 : f32
    %54 = vector.broadcast %cst_30 : f32 to vector<4x128xf32>
    %55 = arith.addf %54, %53 : vector<4x128xf32>
    %56 = arith.divf %54, %55 : vector<4x128xf32>
    %57 = arith.select %43, %51, %56 : vector<4x128xi1>, vector<4x128xf32>
    %58 = vector.extract_strided_slice %57 {offsets = [0, 0], sizes = [4, 32], strides = [1, 1]} : vector<4x128xf32> to vector<4x32xf32>
    %59 = vector.extract_strided_slice %57 {offsets = [0, 32], sizes = [4, 32], strides = [1, 1]} : vector<4x128xf32> to vector<4x32xf32>
    %60 = vector.extract_strided_slice %57 {offsets = [0, 64], sizes = [4, 32], strides = [1, 1]} : vector<4x128xf32> to vector<4x32xf32>
    %61 = vector.extract_strided_slice %57 {offsets = [0, 96], sizes = [4, 32], strides = [1, 1]} : vector<4x128xf32> to vector<4x32xf32>
    %62 = arith.mulf %59, %44 : vector<4x32xf32>
    %63 = arith.mulf %58, %60 : vector<4x32xf32>
    %64 = arith.addf %62, %63 : vector<4x32xf32>
    %65 = math.tanh %64 : vector<4x32xf32>
    %66 = arith.mulf %61, %65 : vector<4x32xf32>
    %c0_31 = arith.constant 0 : index
    %c0_32 = arith.constant 0 : index
    %67 = vector.load %arg13[%c0_31, %c0_32] : memref<4x64xf32, #tpu.memory_space<vmem>>, vector<4x32xf32>
    tpu.vector_store %arg13[%c0_31, %c0_32], %66 {strides = array<i32>} : memref<4x64xf32, #tpu.memory_space<vmem>>, vector<4x32xf32>,
    %c0_33 = arith.constant 0 : index
    %c32 = arith.constant 32 : index
    %68 = vector.load %arg13[%c0_33, %c32] : memref<4x64xf32, #tpu.memory_space<vmem>>, vector<4x32xf32>
    tpu.vector_store %arg13[%c0_33, %c32], %45 {strides = array<i32>} : memref<4x64xf32, #tpu.memory_space<vmem>>, vector<4x32xf32>,
    %c0_34 = arith.constant 0 : index
    %c0_35 = arith.constant 0 : index
    %69 = vector.load %arg13[%c0_34, %c0_35] : memref<4x64xf32, #tpu.memory_space<vmem>>, vector<4x64xf32>
    %cst_36 = arith.constant dense<0.000000e+00> : vector<4x128xf32>
    %70 = tpu.matmul %69, %31, %cst_36 {dimension_numbers = #tpu.dot_dimension_numbers<[1], [0], [0], [1], [0, 0, 1, 1], [], []>} : vector<4x64xf32>, vector<64x128xf32>, vector<4x128xf32> -> vector<4x128xf32>
    %71 = arith.addf %70, %37 : vector<4x128xf32>
    %72 = math.tanh %71 : vector<4x128xf32>
    %73 = arith.negf %71 : vector<4x128xf32>
    %74 = math.exp %73 : vector<4x128xf32>
    %cst_37 = arith.constant 1.000000e+00 : f32
    %75 = vector.broadcast %cst_37 : f32 to vector<4x128xf32>
    %76 = arith.addf %75, %74 : vector<4x128xf32>
    %77 = arith.divf %75, %76 : vector<4x128xf32>
    %78 = arith.select %43, %72, %77 : vector<4x128xi1>, vector<4x128xf32>
    %79 = vector.extract_strided_slice %78 {offsets = [0, 0], sizes = [4, 32], strides = [1, 1]} : vector<4x128xf32> to vector<4x32xf32>
    %80 = vector.extract_strided_slice %78 {offsets = [0, 32], sizes = [4, 32], strides = [1, 1]} : vector<4x128xf32> to vector<4x32xf32>
    %81 = vector.extract_strided_slice %78 {offsets = [0, 64], sizes = [4, 32], strides = [1, 1]} : vector<4x128xf32> to vector<4x32xf32>
    %82 = vector.extract_strided_slice %78 {offsets = [0, 96], sizes = [4, 32], strides = [1, 1]} : vector<4x128xf32> to vector<4x32xf32>
    %83 = arith.mulf %80, %45 : vector<4x32xf32>
    %84 = arith.mulf %79, %81 : vector<4x32xf32>
    %85 = arith.addf %83, %84 : vector<4x32xf32>
    %86 = math.tanh %85 : vector<4x32xf32>
    %87 = arith.mulf %82, %86 : vector<4x32xf32>
    %c0_38 = arith.constant 0 : index
    %c0_39 = arith.constant 0 : index
    %c0_40 = arith.constant 0 : index
    %88 = vector.load %arg11[%c0_38, %c0_39, %c0_40] : memref<8x4x32xf32, #tpu.memory_space<vmem>>, vector<1x4x32xf32>
    %89 = vector.shape_cast %88 : vector<1x4x32xf32> to vector<4x32xf32>
    %90 = vector.shape_cast %87 : vector<4x32xf32> to vector<1x4x32xf32>
    tpu.vector_store %arg11[%c0_38, %c0_39, %c0_40], %90 {strides = array<i32>} : memref<8x4x32xf32, #tpu.memory_space<vmem>>, vector<1x4x32xf32>,
    %c0_41 = arith.constant 0 : index
    %c0_42 = arith.constant 0 : index
    %c0_43 = arith.constant 0 : index
    %91 = vector.load %arg1[%c0_41, %c0_42, %c0_43] : memref<7x4x16xf32, #tpu.memory_space<vmem>>, vector<1x4x16xf32>
    %92 = vector.shape_cast %91 : vector<1x4x16xf32> to vector<4x16xf32>
    %c0_44 = arith.constant 0 : index
    %c0_45 = arith.constant 0 : index
    %93 = vector.load %arg12[%c0_44, %c0_45] : memref<4x48xf32, #tpu.memory_space<vmem>>, vector<4x16xf32>
    tpu.vector_store %arg12[%c0_44, %c0_45], %92 {strides = array<i32>} : memref<4x48xf32, #tpu.memory_space<vmem>>, vector<4x16xf32>,
    %c0_46 = arith.constant 0 : index
    %c16_47 = arith.constant 16 : index
    %94 = vector.load %arg12[%c0_46, %c16_47] : memref<4x48xf32, #tpu.memory_space<vmem>>, vector<4x32xf32>
    tpu.vector_store %arg12[%c0_46, %c16_47], %66 {strides = array<i32>} : memref<4x48xf32, #tpu.memory_space<vmem>>, vector<4x32xf32>,
    %c0_48 = arith.constant 0 : index
    %c0_49 = arith.constant 0 : index
    %95 = vector.load %arg12[%c0_48, %c0_49] : memref<4x48xf32, #tpu.memory_space<vmem>>, vector<4x48xf32>
    %cst_50 = arith.constant dense<0.000000e+00> : vector<4x128xf32>
    %96 = tpu.matmul %95, %30, %cst_50 {dimension_numbers = #tpu.dot_dimension_numbers<[1], [0], [0], [1], [0, 0, 1, 1], [], []>} : vector<4x48xf32>, vector<48x128xf32>, vector<4x128xf32> -> vector<4x128xf32>
    %97 = arith.addf %96, %34 : vector<4x128xf32>
    %98 = math.tanh %97 : vector<4x128xf32>
    %99 = arith.negf %97 : vector<4x128xf32>
    %100 = math.exp %99 : vector<4x128xf32>
    %cst_51 = arith.constant 1.000000e+00 : f32
    %101 = vector.broadcast %cst_51 : f32 to vector<4x128xf32>
    %102 = arith.addf %101, %100 : vector<4x128xf32>
    %103 = arith.divf %101, %102 : vector<4x128xf32>
    %104 = arith.select %43, %98, %103 : vector<4x128xi1>, vector<4x128xf32>
    %105 = vector.extract_strided_slice %104 {offsets = [0, 0], sizes = [4, 32], strides = [1, 1]} : vector<4x128xf32> to vector<4x32xf32>
    %106 = vector.extract_strided_slice %104 {offsets = [0, 32], sizes = [4, 32], strides = [1, 1]} : vector<4x128xf32> to vector<4x32xf32>
    %107 = vector.extract_strided_slice %104 {offsets = [0, 64], sizes = [4, 32], strides = [1, 1]} : vector<4x128xf32> to vector<4x32xf32>
    %108 = vector.extract_strided_slice %104 {offsets = [0, 96], sizes = [4, 32], strides = [1, 1]} : vector<4x128xf32> to vector<4x32xf32>
    %109 = arith.mulf %106, %64 : vector<4x32xf32>
    %110 = arith.mulf %105, %107 : vector<4x32xf32>
    %111 = arith.addf %109, %110 : vector<4x32xf32>
    %112 = math.tanh %111 : vector<4x32xf32>
    %113 = arith.mulf %108, %112 : vector<4x32xf32>
    %c0_52 = arith.constant 0 : index
    %c0_53 = arith.constant 0 : index
    %114 = vector.load %arg13[%c0_52, %c0_53] : memref<4x64xf32, #tpu.memory_space<vmem>>, vector<4x32xf32>
    tpu.vector_store %arg13[%c0_52, %c0_53], %113 {strides = array<i32>} : memref<4x64xf32, #tpu.memory_space<vmem>>, vector<4x32xf32>,
    %c0_54 = arith.constant 0 : index
    %c32_55 = arith.constant 32 : index
    %115 = vector.load %arg13[%c0_54, %c32_55] : memref<4x64xf32, #tpu.memory_space<vmem>>, vector<4x32xf32>
    tpu.vector_store %arg13[%c0_54, %c32_55], %87 {strides = array<i32>} : memref<4x64xf32, #tpu.memory_space<vmem>>, vector<4x32xf32>,
    %c0_56 = arith.constant 0 : index
    %c0_57 = arith.constant 0 : index
    %116 = vector.load %arg13[%c0_56, %c0_57] : memref<4x64xf32, #tpu.memory_space<vmem>>, vector<4x64xf32>
    %cst_58 = arith.constant dense<0.000000e+00> : vector<4x128xf32>
    %117 = tpu.matmul %116, %31, %cst_58 {dimension_numbers = #tpu.dot_dimension_numbers<[1], [0], [0], [1], [0, 0, 1, 1], [], []>} : vector<4x64xf32>, vector<64x128xf32>, vector<4x128xf32> -> vector<4x128xf32>
    %118 = arith.addf %117, %37 : vector<4x128xf32>
    %119 = math.tanh %118 : vector<4x128xf32>
    %120 = arith.negf %118 : vector<4x128xf32>
    %121 = math.exp %120 : vector<4x128xf32>
    %cst_59 = arith.constant 1.000000e+00 : f32
    %122 = vector.broadcast %cst_59 : f32 to vector<4x128xf32>
    %123 = arith.addf %122, %121 : vector<4x128xf32>
    %124 = arith.divf %122, %123 : vector<4x128xf32>
    %125 = arith.select %43, %119, %124 : vector<4x128xi1>, vector<4x128xf32>
    %126 = vector.extract_strided_slice %125 {offsets = [0, 0], sizes = [4, 32], strides = [1, 1]} : vector<4x128xf32> to vector<4x32xf32>
    %127 = vector.extract_strided_slice %125 {offsets = [0, 32], sizes = [4, 32], strides = [1, 1]} : vector<4x128xf32> to vector<4x32xf32>
    %128 = vector.extract_strided_slice %125 {offsets = [0, 64], sizes = [4, 32], strides = [1, 1]} : vector<4x128xf32> to vector<4x32xf32>
    %129 = vector.extract_strided_slice %125 {offsets = [0, 96], sizes = [4, 32], strides = [1, 1]} : vector<4x128xf32> to vector<4x32xf32>
    %130 = arith.mulf %127, %85 : vector<4x32xf32>
    %131 = arith.mulf %126, %128 : vector<4x32xf32>
    %132 = arith.addf %130, %131 : vector<4x32xf32>
    %133 = math.tanh %132 : vector<4x32xf32>
    %134 = arith.mulf %129, %133 : vector<4x32xf32>
    %c1 = arith.constant 1 : index
    %c0_60 = arith.constant 0 : index
    %c0_61 = arith.constant 0 : index
    %135 = vector.load %arg11[%c1, %c0_60, %c0_61] : memref<8x4x32xf32, #tpu.memory_space<vmem>>, vector<1x4x32xf32>
    %136 = vector.shape_cast %135 : vector<1x4x32xf32> to vector<4x32xf32>
    %137 = vector.shape_cast %134 : vector<4x32xf32> to vector<1x4x32xf32>
    tpu.vector_store %arg11[%c1, %c0_60, %c0_61], %137 {strides = array<i32>} : memref<8x4x32xf32, #tpu.memory_space<vmem>>, vector<1x4x32xf32>,
    %c1_62 = arith.constant 1 : index
    %c0_63 = arith.constant 0 : index
    %c0_64 = arith.constant 0 : index
    %138 = vector.load %arg1[%c1_62, %c0_63, %c0_64] : memref<7x4x16xf32, #tpu.memory_space<vmem>>, vector<1x4x16xf32>
    %139 = vector.shape_cast %138 : vector<1x4x16xf32> to vector<4x16xf32>
    %c0_65 = arith.constant 0 : index
    %c0_66 = arith.constant 0 : index
    %140 = vector.load %arg12[%c0_65, %c0_66] : memref<4x48xf32, #tpu.memory_space<vmem>>, vector<4x16xf32>
    tpu.vector_store %arg12[%c0_65, %c0_66], %139 {strides = array<i32>} : memref<4x48xf32, #tpu.memory_space<vmem>>, vector<4x16xf32>,
    %c0_67 = arith.constant 0 : index
    %c16_68 = arith.constant 16 : index
    %141 = vector.load %arg12[%c0_67, %c16_68] : memref<4x48xf32, #tpu.memory_space<vmem>>, vector<4x32xf32>
    tpu.vector_store %arg12[%c0_67, %c16_68], %113 {strides = array<i32>} : memref<4x48xf32, #tpu.memory_space<vmem>>, vector<4x32xf32>,
    %c0_69 = arith.constant 0 : index
    %c0_70 = arith.constant 0 : index
    %142 = vector.load %arg12[%c0_69, %c0_70] : memref<4x48xf32, #tpu.memory_space<vmem>>, vector<4x48xf32>
    %cst_71 = arith.constant dense<0.000000e+00> : vector<4x128xf32>
    %143 = tpu.matmul %142, %30, %cst_71 {dimension_numbers = #tpu.dot_dimension_numbers<[1], [0], [0], [1], [0, 0, 1, 1], [], []>} : vector<4x48xf32>, vector<48x128xf32>, vector<4x128xf32> -> vector<4x128xf32>
    %144 = arith.addf %143, %34 : vector<4x128xf32>
    %145 = math.tanh %144 : vector<4x128xf32>
    %146 = arith.negf %144 : vector<4x128xf32>
    %147 = math.exp %146 : vector<4x128xf32>
    %cst_72 = arith.constant 1.000000e+00 : f32
    %148 = vector.broadcast %cst_72 : f32 to vector<4x128xf32>
    %149 = arith.addf %148, %147 : vector<4x128xf32>
    %150 = arith.divf %148, %149 : vector<4x128xf32>
    %151 = arith.select %43, %145, %150 : vector<4x128xi1>, vector<4x128xf32>
    %152 = vector.extract_strided_slice %151 {offsets = [0, 0], sizes = [4, 32], strides = [1, 1]} : vector<4x128xf32> to vector<4x32xf32>
    %153 = vector.extract_strided_slice %151 {offsets = [0, 32], sizes = [4, 32], strides = [1, 1]} : vector<4x128xf32> to vector<4x32xf32>
    %154 = vector.extract_strided_slice %151 {offsets = [0, 64], sizes = [4, 32], strides = [1, 1]} : vector<4x128xf32> to vector<4x32xf32>
    %155 = vector.extract_strided_slice %151 {offsets = [0, 96], sizes = [4, 32], strides = [1, 1]} : vector<4x128xf32> to vector<4x32xf32>
    %156 = arith.mulf %153, %111 : vector<4x32xf32>
    %157 = arith.mulf %152, %154 : vector<4x32xf32>
    %158 = arith.addf %156, %157 : vector<4x32xf32>
    %159 = math.tanh %158 : vector<4x32xf32>
    %160 = arith.mulf %155, %159 : vector<4x32xf32>
    %c0_73 = arith.constant 0 : index
    %c0_74 = arith.constant 0 : index
    %161 = vector.load %arg13[%c0_73, %c0_74] : memref<4x64xf32, #tpu.memory_space<vmem>>, vector<4x32xf32>
    tpu.vector_store %arg13[%c0_73, %c0_74], %160 {strides = array<i32>} : memref<4x64xf32, #tpu.memory_space<vmem>>, vector<4x32xf32>,
    %c0_75 = arith.constant 0 : index
    %c32_76 = arith.constant 32 : index
    %162 = vector.load %arg13[%c0_75, %c32_76] : memref<4x64xf32, #tpu.memory_space<vmem>>, vector<4x32xf32>
    tpu.vector_store %arg13[%c0_75, %c32_76], %134 {strides = array<i32>} : memref<4x64xf32, #tpu.memory_space<vmem>>, vector<4x32xf32>,
    %c0_77 = arith.constant 0 : index
    %c0_78 = arith.constant 0 : index
    %163 = vector.load %arg13[%c0_77, %c0_78] : memref<4x64xf32, #tpu.memory_space<vmem>>, vector<4x64xf32>
    %cst_79 = arith.constant dense<0.000000e+00> : vector<4x128xf32>
    %164 = tpu.matmul %163, %31, %cst_79 {dimension_numbers = #tpu.dot_dimension_numbers<[1], [0], [0], [1], [0, 0, 1, 1], [], []>} : vector<4x64xf32>, vector<64x128xf32>, vector<4x128xf32> -> vector<4x128xf32>
    %165 = arith.addf %164, %37 : vector<4x128xf32>
    %166 = math.tanh %165 : vector<4x128xf32>
    %167 = arith.negf %165 : vector<4x128xf32>
    %168 = math.exp %167 : vector<4x128xf32>
    %cst_80 = arith.constant 1.000000e+00 : f32
    %169 = vector.broadcast %cst_80 : f32 to vector<4x128xf32>
    %170 = arith.addf %169, %168 : vector<4x128xf32>
    %171 = arith.divf %169, %170 : vector<4x128xf32>
    %172 = arith.select %43, %166, %171 : vector<4x128xi1>, vector<4x128xf32>
    %173 = vector.extract_strided_slice %172 {offsets = [0, 0], sizes = [4, 32], strides = [1, 1]} : vector<4x128xf32> to vector<4x32xf32>
    %174 = vector.extract_strided_slice %172 {offsets = [0, 32], sizes = [4, 32], strides = [1, 1]} : vector<4x128xf32> to vector<4x32xf32>
    %175 = vector.extract_strided_slice %172 {offsets = [0, 64], sizes = [4, 32], strides = [1, 1]} : vector<4x128xf32> to vector<4x32xf32>
    %176 = vector.extract_strided_slice %172 {offsets = [0, 96], sizes = [4, 32], strides = [1, 1]} : vector<4x128xf32> to vector<4x32xf32>
    %177 = arith.mulf %174, %132 : vector<4x32xf32>
    %178 = arith.mulf %173, %175 : vector<4x32xf32>
    %179 = arith.addf %177, %178 : vector<4x32xf32>
    %180 = math.tanh %179 : vector<4x32xf32>
    %181 = arith.mulf %176, %180 : vector<4x32xf32>
    %c2 = arith.constant 2 : index
    %c0_81 = arith.constant 0 : index
    %c0_82 = arith.constant 0 : index
    %182 = vector.load %arg11[%c2, %c0_81, %c0_82] : memref<8x4x32xf32, #tpu.memory_space<vmem>>, vector<1x4x32xf32>
    %183 = vector.shape_cast %182 : vector<1x4x32xf32> to vector<4x32xf32>
    %184 = vector.shape_cast %181 : vector<4x32xf32> to vector<1x4x32xf32>
    tpu.vector_store %arg11[%c2, %c0_81, %c0_82], %184 {strides = array<i32>} : memref<8x4x32xf32, #tpu.memory_space<vmem>>, vector<1x4x32xf32>,
    %c2_83 = arith.constant 2 : index
    %c0_84 = arith.constant 0 : index
    %c0_85 = arith.constant 0 : index
    %185 = vector.load %arg1[%c2_83, %c0_84, %c0_85] : memref<7x4x16xf32, #tpu.memory_space<vmem>>, vector<1x4x16xf32>
    %186 = vector.shape_cast %185 : vector<1x4x16xf32> to vector<4x16xf32>
    %c0_86 = arith.constant 0 : index
    %c0_87 = arith.constant 0 : index
    %187 = vector.load %arg12[%c0_86, %c0_87] : memref<4x48xf32, #tpu.memory_space<vmem>>, vector<4x16xf32>
    tpu.vector_store %arg12[%c0_86, %c0_87], %186 {strides = array<i32>} : memref<4x48xf32, #tpu.memory_space<vmem>>, vector<4x16xf32>,
    %c0_88 = arith.constant 0 : index
    %c16_89 = arith.constant 16 : index
    %188 = vector.load %arg12[%c0_88, %c16_89] : memref<4x48xf32, #tpu.memory_space<vmem>>, vector<4x32xf32>
    tpu.vector_store %arg12[%c0_88, %c16_89], %160 {strides = array<i32>} : memref<4x48xf32, #tpu.memory_space<vmem>>, vector<4x32xf32>,
    %c0_90 = arith.constant 0 : index
    %c0_91 = arith.constant 0 : index
    %189 = vector.load %arg12[%c0_90, %c0_91] : memref<4x48xf32, #tpu.memory_space<vmem>>, vector<4x48xf32>
    %cst_92 = arith.constant dense<0.000000e+00> : vector<4x128xf32>
    %190 = tpu.matmul %189, %30, %cst_92 {dimension_numbers = #tpu.dot_dimension_numbers<[1], [0], [0], [1], [0, 0, 1, 1], [], []>} : vector<4x48xf32>, vector<48x128xf32>, vector<4x128xf32> -> vector<4x128xf32>
    %191 = arith.addf %190, %34 : vector<4x128xf32>
    %192 = math.tanh %191 : vector<4x128xf32>
    %193 = arith.negf %191 : vector<4x128xf32>
    %194 = math.exp %193 : vector<4x128xf32>
    %cst_93 = arith.constant 1.000000e+00 : f32
    %195 = vector.broadcast %cst_93 : f32 to vector<4x128xf32>
    %196 = arith.addf %195, %194 : vector<4x128xf32>
    %197 = arith.divf %195, %196 : vector<4x128xf32>
    %198 = arith.select %43, %192, %197 : vector<4x128xi1>, vector<4x128xf32>
    %199 = vector.extract_strided_slice %198 {offsets = [0, 0], sizes = [4, 32], strides = [1, 1]} : vector<4x128xf32> to vector<4x32xf32>
    %200 = vector.extract_strided_slice %198 {offsets = [0, 32], sizes = [4, 32], strides = [1, 1]} : vector<4x128xf32> to vector<4x32xf32>
    %201 = vector.extract_strided_slice %198 {offsets = [0, 64], sizes = [4, 32], strides = [1, 1]} : vector<4x128xf32> to vector<4x32xf32>
    %202 = vector.extract_strided_slice %198 {offsets = [0, 96], sizes = [4, 32], strides = [1, 1]} : vector<4x128xf32> to vector<4x32xf32>
    %203 = arith.mulf %200, %158 : vector<4x32xf32>
    %204 = arith.mulf %199, %201 : vector<4x32xf32>
    %205 = arith.addf %203, %204 : vector<4x32xf32>
    %206 = math.tanh %205 : vector<4x32xf32>
    %207 = arith.mulf %202, %206 : vector<4x32xf32>
    %c0_94 = arith.constant 0 : index
    %c0_95 = arith.constant 0 : index
    %208 = vector.load %arg13[%c0_94, %c0_95] : memref<4x64xf32, #tpu.memory_space<vmem>>, vector<4x32xf32>
    tpu.vector_store %arg13[%c0_94, %c0_95], %207 {strides = array<i32>} : memref<4x64xf32, #tpu.memory_space<vmem>>, vector<4x32xf32>,
    %c0_96 = arith.constant 0 : index
    %c32_97 = arith.constant 32 : index
    %209 = vector.load %arg13[%c0_96, %c32_97] : memref<4x64xf32, #tpu.memory_space<vmem>>, vector<4x32xf32>
    tpu.vector_store %arg13[%c0_96, %c32_97], %181 {strides = array<i32>} : memref<4x64xf32, #tpu.memory_space<vmem>>, vector<4x32xf32>,
    %c0_98 = arith.constant 0 : index
    %c0_99 = arith.constant 0 : index
    %210 = vector.load %arg13[%c0_98, %c0_99] : memref<4x64xf32, #tpu.memory_space<vmem>>, vector<4x64xf32>
    %cst_100 = arith.constant dense<0.000000e+00> : vector<4x128xf32>
    %211 = tpu.matmul %210, %31, %cst_100 {dimension_numbers = #tpu.dot_dimension_numbers<[1], [0], [0], [1], [0, 0, 1, 1], [], []>} : vector<4x64xf32>, vector<64x128xf32>, vector<4x128xf32> -> vector<4x128xf32>
    %212 = arith.addf %211, %37 : vector<4x128xf32>
    %213 = math.tanh %212 : vector<4x128xf32>
    %214 = arith.negf %212 : vector<4x128xf32>
    %215 = math.exp %214 : vector<4x128xf32>
    %cst_101 = arith.constant 1.000000e+00 : f32
    %216 = vector.broadcast %cst_101 : f32 to vector<4x128xf32>
    %217 = arith.addf %216, %215 : vector<4x128xf32>
    %218 = arith.divf %216, %217 : vector<4x128xf32>
    %219 = arith.select %43, %213, %218 : vector<4x128xi1>, vector<4x128xf32>
    %220 = vector.extract_strided_slice %219 {offsets = [0, 0], sizes = [4, 32], strides = [1, 1]} : vector<4x128xf32> to vector<4x32xf32>
    %221 = vector.extract_strided_slice %219 {offsets = [0, 32], sizes = [4, 32], strides = [1, 1]} : vector<4x128xf32> to vector<4x32xf32>
    %222 = vector.extract_strided_slice %219 {offsets = [0, 64], sizes = [4, 32], strides = [1, 1]} : vector<4x128xf32> to vector<4x32xf32>
    %223 = vector.extract_strided_slice %219 {offsets = [0, 96], sizes = [4, 32], strides = [1, 1]} : vector<4x128xf32> to vector<4x32xf32>
    %224 = arith.mulf %221, %179 : vector<4x32xf32>
    %225 = arith.mulf %220, %222 : vector<4x32xf32>
    %226 = arith.addf %224, %225 : vector<4x32xf32>
    %227 = math.tanh %226 : vector<4x32xf32>
    %228 = arith.mulf %223, %227 : vector<4x32xf32>
    %c3 = arith.constant 3 : index
    %c0_102 = arith.constant 0 : index
    %c0_103 = arith.constant 0 : index
    %229 = vector.load %arg11[%c3, %c0_102, %c0_103] : memref<8x4x32xf32, #tpu.memory_space<vmem>>, vector<1x4x32xf32>
    %230 = vector.shape_cast %229 : vector<1x4x32xf32> to vector<4x32xf32>
    %231 = vector.shape_cast %228 : vector<4x32xf32> to vector<1x4x32xf32>
    tpu.vector_store %arg11[%c3, %c0_102, %c0_103], %231 {strides = array<i32>} : memref<8x4x32xf32, #tpu.memory_space<vmem>>, vector<1x4x32xf32>,
    %c3_104 = arith.constant 3 : index
    %c0_105 = arith.constant 0 : index
    %c0_106 = arith.constant 0 : index
    %232 = vector.load %arg1[%c3_104, %c0_105, %c0_106] : memref<7x4x16xf32, #tpu.memory_space<vmem>>, vector<1x4x16xf32>
    %233 = vector.shape_cast %232 : vector<1x4x16xf32> to vector<4x16xf32>
    %c0_107 = arith.constant 0 : index
    %c0_108 = arith.constant 0 : index
    %234 = vector.load %arg12[%c0_107, %c0_108] : memref<4x48xf32, #tpu.memory_space<vmem>>, vector<4x16xf32>
    tpu.vector_store %arg12[%c0_107, %c0_108], %233 {strides = array<i32>} : memref<4x48xf32, #tpu.memory_space<vmem>>, vector<4x16xf32>,
    %c0_109 = arith.constant 0 : index
    %c16_110 = arith.constant 16 : index
    %235 = vector.load %arg12[%c0_109, %c16_110] : memref<4x48xf32, #tpu.memory_space<vmem>>, vector<4x32xf32>
    tpu.vector_store %arg12[%c0_109, %c16_110], %207 {strides = array<i32>} : memref<4x48xf32, #tpu.memory_space<vmem>>, vector<4x32xf32>,
    %c0_111 = arith.constant 0 : index
    %c0_112 = arith.constant 0 : index
    %236 = vector.load %arg12[%c0_111, %c0_112] : memref<4x48xf32, #tpu.memory_space<vmem>>, vector<4x48xf32>
    %cst_113 = arith.constant dense<0.000000e+00> : vector<4x128xf32>
    %237 = tpu.matmul %236, %30, %cst_113 {dimension_numbers = #tpu.dot_dimension_numbers<[1], [0], [0], [1], [0, 0, 1, 1], [], []>} : vector<4x48xf32>, vector<48x128xf32>, vector<4x128xf32> -> vector<4x128xf32>
    %238 = arith.addf %237, %34 : vector<4x128xf32>
    %239 = math.tanh %238 : vector<4x128xf32>
    %240 = arith.negf %238 : vector<4x128xf32>
    %241 = math.exp %240 : vector<4x128xf32>
    %cst_114 = arith.constant 1.000000e+00 : f32
    %242 = vector.broadcast %cst_114 : f32 to vector<4x128xf32>
    %243 = arith.addf %242, %241 : vector<4x128xf32>
    %244 = arith.divf %242, %243 : vector<4x128xf32>
    %245 = arith.select %43, %239, %244 : vector<4x128xi1>, vector<4x128xf32>
    %246 = vector.extract_strided_slice %245 {offsets = [0, 0], sizes = [4, 32], strides = [1, 1]} : vector<4x128xf32> to vector<4x32xf32>
    %247 = vector.extract_strided_slice %245 {offsets = [0, 32], sizes = [4, 32], strides = [1, 1]} : vector<4x128xf32> to vector<4x32xf32>
    %248 = vector.extract_strided_slice %245 {offsets = [0, 64], sizes = [4, 32], strides = [1, 1]} : vector<4x128xf32> to vector<4x32xf32>
    %249 = vector.extract_strided_slice %245 {offsets = [0, 96], sizes = [4, 32], strides = [1, 1]} : vector<4x128xf32> to vector<4x32xf32>
    %250 = arith.mulf %247, %205 : vector<4x32xf32>
    %251 = arith.mulf %246, %248 : vector<4x32xf32>
    %252 = arith.addf %250, %251 : vector<4x32xf32>
    %253 = math.tanh %252 : vector<4x32xf32>
    %254 = arith.mulf %249, %253 : vector<4x32xf32>
    %c0_115 = arith.constant 0 : index
    %c0_116 = arith.constant 0 : index
    %255 = vector.load %arg13[%c0_115, %c0_116] : memref<4x64xf32, #tpu.memory_space<vmem>>, vector<4x32xf32>
    tpu.vector_store %arg13[%c0_115, %c0_116], %254 {strides = array<i32>} : memref<4x64xf32, #tpu.memory_space<vmem>>, vector<4x32xf32>,
    %c0_117 = arith.constant 0 : index
    %c32_118 = arith.constant 32 : index
    %256 = vector.load %arg13[%c0_117, %c32_118] : memref<4x64xf32, #tpu.memory_space<vmem>>, vector<4x32xf32>
    tpu.vector_store %arg13[%c0_117, %c32_118], %228 {strides = array<i32>} : memref<4x64xf32, #tpu.memory_space<vmem>>, vector<4x32xf32>,
    %c0_119 = arith.constant 0 : index
    %c0_120 = arith.constant 0 : index
    %257 = vector.load %arg13[%c0_119, %c0_120] : memref<4x64xf32, #tpu.memory_space<vmem>>, vector<4x64xf32>
    %cst_121 = arith.constant dense<0.000000e+00> : vector<4x128xf32>
    %258 = tpu.matmul %257, %31, %cst_121 {dimension_numbers = #tpu.dot_dimension_numbers<[1], [0], [0], [1], [0, 0, 1, 1], [], []>} : vector<4x64xf32>, vector<64x128xf32>, vector<4x128xf32> -> vector<4x128xf32>
    %259 = arith.addf %258, %37 : vector<4x128xf32>
    %260 = math.tanh %259 : vector<4x128xf32>
    %261 = arith.negf %259 : vector<4x128xf32>
    %262 = math.exp %261 : vector<4x128xf32>
    %cst_122 = arith.constant 1.000000e+00 : f32
    %263 = vector.broadcast %cst_122 : f32 to vector<4x128xf32>
    %264 = arith.addf %263, %262 : vector<4x128xf32>
    %265 = arith.divf %263, %264 : vector<4x128xf32>
    %266 = arith.select %43, %260, %265 : vector<4x128xi1>, vector<4x128xf32>
    %267 = vector.extract_strided_slice %266 {offsets = [0, 0], sizes = [4, 32], strides = [1, 1]} : vector<4x128xf32> to vector<4x32xf32>
    %268 = vector.extract_strided_slice %266 {offsets = [0, 32], sizes = [4, 32], strides = [1, 1]} : vector<4x128xf32> to vector<4x32xf32>
    %269 = vector.extract_strided_slice %266 {offsets = [0, 64], sizes = [4, 32], strides = [1, 1]} : vector<4x128xf32> to vector<4x32xf32>
    %270 = vector.extract_strided_slice %266 {offsets = [0, 96], sizes = [4, 32], strides = [1, 1]} : vector<4x128xf32> to vector<4x32xf32>
    %271 = arith.mulf %268, %226 : vector<4x32xf32>
    %272 = arith.mulf %267, %269 : vector<4x32xf32>
    %273 = arith.addf %271, %272 : vector<4x32xf32>
    %274 = math.tanh %273 : vector<4x32xf32>
    %275 = arith.mulf %270, %274 : vector<4x32xf32>
    %c4 = arith.constant 4 : index
    %c0_123 = arith.constant 0 : index
    %c0_124 = arith.constant 0 : index
    %276 = vector.load %arg11[%c4, %c0_123, %c0_124] : memref<8x4x32xf32, #tpu.memory_space<vmem>>, vector<1x4x32xf32>
    %277 = vector.shape_cast %276 : vector<1x4x32xf32> to vector<4x32xf32>
    %278 = vector.shape_cast %275 : vector<4x32xf32> to vector<1x4x32xf32>
    tpu.vector_store %arg11[%c4, %c0_123, %c0_124], %278 {strides = array<i32>} : memref<8x4x32xf32, #tpu.memory_space<vmem>>, vector<1x4x32xf32>,
    %c4_125 = arith.constant 4 : index
    %c0_126 = arith.constant 0 : index
    %c0_127 = arith.constant 0 : index
    %279 = vector.load %arg1[%c4_125, %c0_126, %c0_127] : memref<7x4x16xf32, #tpu.memory_space<vmem>>, vector<1x4x16xf32>
    %280 = vector.shape_cast %279 : vector<1x4x16xf32> to vector<4x16xf32>
    %c0_128 = arith.constant 0 : index
    %c0_129 = arith.constant 0 : index
    %281 = vector.load %arg12[%c0_128, %c0_129] : memref<4x48xf32, #tpu.memory_space<vmem>>, vector<4x16xf32>
    tpu.vector_store %arg12[%c0_128, %c0_129], %280 {strides = array<i32>} : memref<4x48xf32, #tpu.memory_space<vmem>>, vector<4x16xf32>,
    %c0_130 = arith.constant 0 : index
    %c16_131 = arith.constant 16 : index
    %282 = vector.load %arg12[%c0_130, %c16_131] : memref<4x48xf32, #tpu.memory_space<vmem>>, vector<4x32xf32>
    tpu.vector_store %arg12[%c0_130, %c16_131], %254 {strides = array<i32>} : memref<4x48xf32, #tpu.memory_space<vmem>>, vector<4x32xf32>,
    %c0_132 = arith.constant 0 : index
    %c0_133 = arith.constant 0 : index
    %283 = vector.load %arg12[%c0_132, %c0_133] : memref<4x48xf32, #tpu.memory_space<vmem>>, vector<4x48xf32>
    %cst_134 = arith.constant dense<0.000000e+00> : vector<4x128xf32>
    %284 = tpu.matmul %283, %30, %cst_134 {dimension_numbers = #tpu.dot_dimension_numbers<[1], [0], [0], [1], [0, 0, 1, 1], [], []>} : vector<4x48xf32>, vector<48x128xf32>, vector<4x128xf32> -> vector<4x128xf32>
    %285 = arith.addf %284, %34 : vector<4x128xf32>
    %286 = math.tanh %285 : vector<4x128xf32>
    %287 = arith.negf %285 : vector<4x128xf32>
    %288 = math.exp %287 : vector<4x128xf32>
    %cst_135 = arith.constant 1.000000e+00 : f32
    %289 = vector.broadcast %cst_135 : f32 to vector<4x128xf32>
    %290 = arith.addf %289, %288 : vector<4x128xf32>
    %291 = arith.divf %289, %290 : vector<4x128xf32>
    %292 = arith.select %43, %286, %291 : vector<4x128xi1>, vector<4x128xf32>
    %293 = vector.extract_strided_slice %292 {offsets = [0, 0], sizes = [4, 32], strides = [1, 1]} : vector<4x128xf32> to vector<4x32xf32>
    %294 = vector.extract_strided_slice %292 {offsets = [0, 32], sizes = [4, 32], strides = [1, 1]} : vector<4x128xf32> to vector<4x32xf32>
    %295 = vector.extract_strided_slice %292 {offsets = [0, 64], sizes = [4, 32], strides = [1, 1]} : vector<4x128xf32> to vector<4x32xf32>
    %296 = vector.extract_strided_slice %292 {offsets = [0, 96], sizes = [4, 32], strides = [1, 1]} : vector<4x128xf32> to vector<4x32xf32>
    %297 = arith.mulf %294, %252 : vector<4x32xf32>
    %298 = arith.mulf %293, %295 : vector<4x32xf32>
    %299 = arith.addf %297, %298 : vector<4x32xf32>
    %300 = math.tanh %299 : vector<4x32xf32>
    %301 = arith.mulf %296, %300 : vector<4x32xf32>
    %c0_136 = arith.constant 0 : index
    %c0_137 = arith.constant 0 : index
    %302 = vector.load %arg13[%c0_136, %c0_137] : memref<4x64xf32, #tpu.memory_space<vmem>>, vector<4x32xf32>
    tpu.vector_store %arg13[%c0_136, %c0_137], %301 {strides = array<i32>} : memref<4x64xf32, #tpu.memory_space<vmem>>, vector<4x32xf32>,
    %c0_138 = arith.constant 0 : index
    %c32_139 = arith.constant 32 : index
    %303 = vector.load %arg13[%c0_138, %c32_139] : memref<4x64xf32, #tpu.memory_space<vmem>>, vector<4x32xf32>
    tpu.vector_store %arg13[%c0_138, %c32_139], %275 {strides = array<i32>} : memref<4x64xf32, #tpu.memory_space<vmem>>, vector<4x32xf32>,
    %c0_140 = arith.constant 0 : index
    %c0_141 = arith.constant 0 : index
    %304 = vector.load %arg13[%c0_140, %c0_141] : memref<4x64xf32, #tpu.memory_space<vmem>>, vector<4x64xf32>
    %cst_142 = arith.constant dense<0.000000e+00> : vector<4x128xf32>
    %305 = tpu.matmul %304, %31, %cst_142 {dimension_numbers = #tpu.dot_dimension_numbers<[1], [0], [0], [1], [0, 0, 1, 1], [], []>} : vector<4x64xf32>, vector<64x128xf32>, vector<4x128xf32> -> vector<4x128xf32>
    %306 = arith.addf %305, %37 : vector<4x128xf32>
    %307 = math.tanh %306 : vector<4x128xf32>
    %308 = arith.negf %306 : vector<4x128xf32>
    %309 = math.exp %308 : vector<4x128xf32>
    %cst_143 = arith.constant 1.000000e+00 : f32
    %310 = vector.broadcast %cst_143 : f32 to vector<4x128xf32>
    %311 = arith.addf %310, %309 : vector<4x128xf32>
    %312 = arith.divf %310, %311 : vector<4x128xf32>
    %313 = arith.select %43, %307, %312 : vector<4x128xi1>, vector<4x128xf32>
    %314 = vector.extract_strided_slice %313 {offsets = [0, 0], sizes = [4, 32], strides = [1, 1]} : vector<4x128xf32> to vector<4x32xf32>
    %315 = vector.extract_strided_slice %313 {offsets = [0, 32], sizes = [4, 32], strides = [1, 1]} : vector<4x128xf32> to vector<4x32xf32>
    %316 = vector.extract_strided_slice %313 {offsets = [0, 64], sizes = [4, 32], strides = [1, 1]} : vector<4x128xf32> to vector<4x32xf32>
    %317 = vector.extract_strided_slice %313 {offsets = [0, 96], sizes = [4, 32], strides = [1, 1]} : vector<4x128xf32> to vector<4x32xf32>
    %318 = arith.mulf %315, %273 : vector<4x32xf32>
    %319 = arith.mulf %314, %316 : vector<4x32xf32>
    %320 = arith.addf %318, %319 : vector<4x32xf32>
    %321 = math.tanh %320 : vector<4x32xf32>
    %322 = arith.mulf %317, %321 : vector<4x32xf32>
    %c5 = arith.constant 5 : index
    %c0_144 = arith.constant 0 : index
    %c0_145 = arith.constant 0 : index
    %323 = vector.load %arg11[%c5, %c0_144, %c0_145] : memref<8x4x32xf32, #tpu.memory_space<vmem>>, vector<1x4x32xf32>
    %324 = vector.shape_cast %323 : vector<1x4x32xf32> to vector<4x32xf32>
    %325 = vector.shape_cast %322 : vector<4x32xf32> to vector<1x4x32xf32>
    tpu.vector_store %arg11[%c5, %c0_144, %c0_145], %325 {strides = array<i32>} : memref<8x4x32xf32, #tpu.memory_space<vmem>>, vector<1x4x32xf32>,
    %c5_146 = arith.constant 5 : index
    %c0_147 = arith.constant 0 : index
    %c0_148 = arith.constant 0 : index
    %326 = vector.load %arg1[%c5_146, %c0_147, %c0_148] : memref<7x4x16xf32, #tpu.memory_space<vmem>>, vector<1x4x16xf32>
    %327 = vector.shape_cast %326 : vector<1x4x16xf32> to vector<4x16xf32>
    %c0_149 = arith.constant 0 : index
    %c0_150 = arith.constant 0 : index
    %328 = vector.load %arg12[%c0_149, %c0_150] : memref<4x48xf32, #tpu.memory_space<vmem>>, vector<4x16xf32>
    tpu.vector_store %arg12[%c0_149, %c0_150], %327 {strides = array<i32>} : memref<4x48xf32, #tpu.memory_space<vmem>>, vector<4x16xf32>,
    %c0_151 = arith.constant 0 : index
    %c16_152 = arith.constant 16 : index
    %329 = vector.load %arg12[%c0_151, %c16_152] : memref<4x48xf32, #tpu.memory_space<vmem>>, vector<4x32xf32>
    tpu.vector_store %arg12[%c0_151, %c16_152], %301 {strides = array<i32>} : memref<4x48xf32, #tpu.memory_space<vmem>>, vector<4x32xf32>,
    %c0_153 = arith.constant 0 : index
    %c0_154 = arith.constant 0 : index
    %330 = vector.load %arg12[%c0_153, %c0_154] : memref<4x48xf32, #tpu.memory_space<vmem>>, vector<4x48xf32>
    %cst_155 = arith.constant dense<0.000000e+00> : vector<4x128xf32>
    %331 = tpu.matmul %330, %30, %cst_155 {dimension_numbers = #tpu.dot_dimension_numbers<[1], [0], [0], [1], [0, 0, 1, 1], [], []>} : vector<4x48xf32>, vector<48x128xf32>, vector<4x128xf32> -> vector<4x128xf32>
    %332 = arith.addf %331, %34 : vector<4x128xf32>
    %333 = math.tanh %332 : vector<4x128xf32>
    %334 = arith.negf %332 : vector<4x128xf32>
    %335 = math.exp %334 : vector<4x128xf32>
    %cst_156 = arith.constant 1.000000e+00 : f32
    %336 = vector.broadcast %cst_156 : f32 to vector<4x128xf32>
    %337 = arith.addf %336, %335 : vector<4x128xf32>
    %338 = arith.divf %336, %337 : vector<4x128xf32>
    %339 = arith.select %43, %333, %338 : vector<4x128xi1>, vector<4x128xf32>
    %340 = vector.extract_strided_slice %339 {offsets = [0, 0], sizes = [4, 32], strides = [1, 1]} : vector<4x128xf32> to vector<4x32xf32>
    %341 = vector.extract_strided_slice %339 {offsets = [0, 32], sizes = [4, 32], strides = [1, 1]} : vector<4x128xf32> to vector<4x32xf32>
    %342 = vector.extract_strided_slice %339 {offsets = [0, 64], sizes = [4, 32], strides = [1, 1]} : vector<4x128xf32> to vector<4x32xf32>
    %343 = vector.extract_strided_slice %339 {offsets = [0, 96], sizes = [4, 32], strides = [1, 1]} : vector<4x128xf32> to vector<4x32xf32>
    %344 = arith.mulf %341, %299 : vector<4x32xf32>
    %345 = arith.mulf %340, %342 : vector<4x32xf32>
    %346 = arith.addf %344, %345 : vector<4x32xf32>
    %347 = math.tanh %346 : vector<4x32xf32>
    %348 = arith.mulf %343, %347 : vector<4x32xf32>
    %c0_157 = arith.constant 0 : index
    %c0_158 = arith.constant 0 : index
    %349 = vector.load %arg13[%c0_157, %c0_158] : memref<4x64xf32, #tpu.memory_space<vmem>>, vector<4x32xf32>
    tpu.vector_store %arg13[%c0_157, %c0_158], %348 {strides = array<i32>} : memref<4x64xf32, #tpu.memory_space<vmem>>, vector<4x32xf32>,
    %c0_159 = arith.constant 0 : index
    %c32_160 = arith.constant 32 : index
    %350 = vector.load %arg13[%c0_159, %c32_160] : memref<4x64xf32, #tpu.memory_space<vmem>>, vector<4x32xf32>
    tpu.vector_store %arg13[%c0_159, %c32_160], %322 {strides = array<i32>} : memref<4x64xf32, #tpu.memory_space<vmem>>, vector<4x32xf32>,
    %c0_161 = arith.constant 0 : index
    %c0_162 = arith.constant 0 : index
    %351 = vector.load %arg13[%c0_161, %c0_162] : memref<4x64xf32, #tpu.memory_space<vmem>>, vector<4x64xf32>
    %cst_163 = arith.constant dense<0.000000e+00> : vector<4x128xf32>
    %352 = tpu.matmul %351, %31, %cst_163 {dimension_numbers = #tpu.dot_dimension_numbers<[1], [0], [0], [1], [0, 0, 1, 1], [], []>} : vector<4x64xf32>, vector<64x128xf32>, vector<4x128xf32> -> vector<4x128xf32>
    %353 = arith.addf %352, %37 : vector<4x128xf32>
    %354 = math.tanh %353 : vector<4x128xf32>
    %355 = arith.negf %353 : vector<4x128xf32>
    %356 = math.exp %355 : vector<4x128xf32>
    %cst_164 = arith.constant 1.000000e+00 : f32
    %357 = vector.broadcast %cst_164 : f32 to vector<4x128xf32>
    %358 = arith.addf %357, %356 : vector<4x128xf32>
    %359 = arith.divf %357, %358 : vector<4x128xf32>
    %360 = arith.select %43, %354, %359 : vector<4x128xi1>, vector<4x128xf32>
    %361 = vector.extract_strided_slice %360 {offsets = [0, 0], sizes = [4, 32], strides = [1, 1]} : vector<4x128xf32> to vector<4x32xf32>
    %362 = vector.extract_strided_slice %360 {offsets = [0, 32], sizes = [4, 32], strides = [1, 1]} : vector<4x128xf32> to vector<4x32xf32>
    %363 = vector.extract_strided_slice %360 {offsets = [0, 64], sizes = [4, 32], strides = [1, 1]} : vector<4x128xf32> to vector<4x32xf32>
    %364 = vector.extract_strided_slice %360 {offsets = [0, 96], sizes = [4, 32], strides = [1, 1]} : vector<4x128xf32> to vector<4x32xf32>
    %365 = arith.mulf %362, %320 : vector<4x32xf32>
    %366 = arith.mulf %361, %363 : vector<4x32xf32>
    %367 = arith.addf %365, %366 : vector<4x32xf32>
    %368 = math.tanh %367 : vector<4x32xf32>
    %369 = arith.mulf %364, %368 : vector<4x32xf32>
    %c6 = arith.constant 6 : index
    %c0_165 = arith.constant 0 : index
    %c0_166 = arith.constant 0 : index
    %370 = vector.load %arg11[%c6, %c0_165, %c0_166] : memref<8x4x32xf32, #tpu.memory_space<vmem>>, vector<1x4x32xf32>
    %371 = vector.shape_cast %370 : vector<1x4x32xf32> to vector<4x32xf32>
    %372 = vector.shape_cast %369 : vector<4x32xf32> to vector<1x4x32xf32>
    tpu.vector_store %arg11[%c6, %c0_165, %c0_166], %372 {strides = array<i32>} : memref<8x4x32xf32, #tpu.memory_space<vmem>>, vector<1x4x32xf32>,
    %c6_167 = arith.constant 6 : index
    %c0_168 = arith.constant 0 : index
    %c0_169 = arith.constant 0 : index
    %373 = vector.load %arg1[%c6_167, %c0_168, %c0_169] : memref<7x4x16xf32, #tpu.memory_space<vmem>>, vector<1x4x16xf32>
    %374 = vector.shape_cast %373 : vector<1x4x16xf32> to vector<4x16xf32>
    %c0_170 = arith.constant 0 : index
    %c0_171 = arith.constant 0 : index
    %375 = vector.load %arg12[%c0_170, %c0_171] : memref<4x48xf32, #tpu.memory_space<vmem>>, vector<4x16xf32>
    tpu.vector_store %arg12[%c0_170, %c0_171], %374 {strides = array<i32>} : memref<4x48xf32, #tpu.memory_space<vmem>>, vector<4x16xf32>,
    %c0_172 = arith.constant 0 : index
    %c16_173 = arith.constant 16 : index
    %376 = vector.load %arg12[%c0_172, %c16_173] : memref<4x48xf32, #tpu.memory_space<vmem>>, vector<4x32xf32>
    tpu.vector_store %arg12[%c0_172, %c16_173], %348 {strides = array<i32>} : memref<4x48xf32, #tpu.memory_space<vmem>>, vector<4x32xf32>,
    %c0_174 = arith.constant 0 : index
    %c0_175 = arith.constant 0 : index
    %377 = vector.load %arg12[%c0_174, %c0_175] : memref<4x48xf32, #tpu.memory_space<vmem>>, vector<4x48xf32>
    %cst_176 = arith.constant dense<0.000000e+00> : vector<4x128xf32>
    %378 = tpu.matmul %377, %30, %cst_176 {dimension_numbers = #tpu.dot_dimension_numbers<[1], [0], [0], [1], [0, 0, 1, 1], [], []>} : vector<4x48xf32>, vector<48x128xf32>, vector<4x128xf32> -> vector<4x128xf32>
    %379 = arith.addf %378, %34 : vector<4x128xf32>
    %380 = math.tanh %379 : vector<4x128xf32>
    %381 = arith.negf %379 : vector<4x128xf32>
    %382 = math.exp %381 : vector<4x128xf32>
    %cst_177 = arith.constant 1.000000e+00 : f32
    %383 = vector.broadcast %cst_177 : f32 to vector<4x128xf32>
    %384 = arith.addf %383, %382 : vector<4x128xf32>
    %385 = arith.divf %383, %384 : vector<4x128xf32>
    %386 = arith.select %43, %380, %385 : vector<4x128xi1>, vector<4x128xf32>
    %387 = vector.extract_strided_slice %386 {offsets = [0, 0], sizes = [4, 32], strides = [1, 1]} : vector<4x128xf32> to vector<4x32xf32>
    %388 = vector.extract_strided_slice %386 {offsets = [0, 32], sizes = [4, 32], strides = [1, 1]} : vector<4x128xf32> to vector<4x32xf32>
    %389 = vector.extract_strided_slice %386 {offsets = [0, 64], sizes = [4, 32], strides = [1, 1]} : vector<4x128xf32> to vector<4x32xf32>
    %390 = vector.extract_strided_slice %386 {offsets = [0, 96], sizes = [4, 32], strides = [1, 1]} : vector<4x128xf32> to vector<4x32xf32>
    %391 = arith.mulf %388, %346 : vector<4x32xf32>
    %392 = arith.mulf %387, %389 : vector<4x32xf32>
    %393 = arith.addf %391, %392 : vector<4x32xf32>
    %394 = math.tanh %393 : vector<4x32xf32>
    %395 = arith.mulf %390, %394 : vector<4x32xf32>
    %c0_178 = arith.constant 0 : index
    %c0_179 = arith.constant 0 : index
    %396 = vector.load %arg13[%c0_178, %c0_179] : memref<4x64xf32, #tpu.memory_space<vmem>>, vector<4x32xf32>
    tpu.vector_store %arg13[%c0_178, %c0_179], %395 {strides = array<i32>} : memref<4x64xf32, #tpu.memory_space<vmem>>, vector<4x32xf32>,
    %c0_180 = arith.constant 0 : index
    %c32_181 = arith.constant 32 : index
    %397 = vector.load %arg13[%c0_180, %c32_181] : memref<4x64xf32, #tpu.memory_space<vmem>>, vector<4x32xf32>
    tpu.vector_store %arg13[%c0_180, %c32_181], %369 {strides = array<i32>} : memref<4x64xf32, #tpu.memory_space<vmem>>, vector<4x32xf32>,
    %c0_182 = arith.constant 0 : index
    %c0_183 = arith.constant 0 : index
    %398 = vector.load %arg13[%c0_182, %c0_183] : memref<4x64xf32, #tpu.memory_space<vmem>>, vector<4x64xf32>
    %cst_184 = arith.constant dense<0.000000e+00> : vector<4x128xf32>
    %399 = tpu.matmul %398, %31, %cst_184 {dimension_numbers = #tpu.dot_dimension_numbers<[1], [0], [0], [1], [0, 0, 1, 1], [], []>} : vector<4x64xf32>, vector<64x128xf32>, vector<4x128xf32> -> vector<4x128xf32>
    %400 = arith.addf %399, %37 : vector<4x128xf32>
    %401 = math.tanh %400 : vector<4x128xf32>
    %402 = arith.negf %400 : vector<4x128xf32>
    %403 = math.exp %402 : vector<4x128xf32>
    %cst_185 = arith.constant 1.000000e+00 : f32
    %404 = vector.broadcast %cst_185 : f32 to vector<4x128xf32>
    %405 = arith.addf %404, %403 : vector<4x128xf32>
    %406 = arith.divf %404, %405 : vector<4x128xf32>
    %407 = arith.select %43, %401, %406 : vector<4x128xi1>, vector<4x128xf32>
    %408 = vector.extract_strided_slice %407 {offsets = [0, 0], sizes = [4, 32], strides = [1, 1]} : vector<4x128xf32> to vector<4x32xf32>
    %409 = vector.extract_strided_slice %407 {offsets = [0, 32], sizes = [4, 32], strides = [1, 1]} : vector<4x128xf32> to vector<4x32xf32>
    %410 = vector.extract_strided_slice %407 {offsets = [0, 64], sizes = [4, 32], strides = [1, 1]} : vector<4x128xf32> to vector<4x32xf32>
    %411 = vector.extract_strided_slice %407 {offsets = [0, 96], sizes = [4, 32], strides = [1, 1]} : vector<4x128xf32> to vector<4x32xf32>
    %412 = arith.mulf %409, %367 : vector<4x32xf32>
    %413 = arith.mulf %408, %410 : vector<4x32xf32>
    %414 = arith.addf %412, %413 : vector<4x32xf32>
    %415 = math.tanh %414 : vector<4x32xf32>
    %416 = arith.mulf %411, %415 : vector<4x32xf32>
    %c7 = arith.constant 7 : index
    %c0_186 = arith.constant 0 : index
    %c0_187 = arith.constant 0 : index
    %417 = vector.load %arg11[%c7, %c0_186, %c0_187] : memref<8x4x32xf32, #tpu.memory_space<vmem>>, vector<1x4x32xf32>
    %418 = vector.shape_cast %417 : vector<1x4x32xf32> to vector<4x32xf32>
    %419 = vector.shape_cast %416 : vector<4x32xf32> to vector<1x4x32xf32>
    tpu.vector_store %arg11[%c7, %c0_186, %c0_187], %419 {strides = array<i32>} : memref<8x4x32xf32, #tpu.memory_space<vmem>>, vector<1x4x32xf32>,
    %c0_188 = arith.constant 0 : index
    %c0_189 = arith.constant 0 : index
    %420 = vector.load %arg2[%c0_188, %c0_189] : memref<4x1xi32, #tpu.memory_space<vmem>>, vector<4x1xi32>
    %421 = tpu.iota {dimensions = array<i32: 0>} : vector<8x4x1xi32>
    %422 = vector.shape_cast %420 : vector<4x1xi32> to vector<1x4x1xi32>
    %423 = vector.broadcast %422 : vector<1x4x1xi32> to vector<8x4x1xi32>
    %424 = arith.cmpi slt, %421, %423 : vector<8x4x1xi32>
    %c0_190 = arith.constant 0 : index
    %c0_191 = arith.constant 0 : index
    %c0_192 = arith.constant 0 : index
    %425 = vector.load %arg11[%c0_190, %c0_191, %c0_192] : memref<8x4x32xf32, #tpu.memory_space<vmem>>, vector<8x4x32xf32>
    %cst_193 = arith.constant 0.000000e+00 : f32
    %426 = vector.shape_cast %424 : vector<8x4x1xi1> to vector<8x4x1xi1>
    %427 = vector.broadcast %426 : vector<8x4x1xi1> to vector<8x4x32xi1>
    %428 = vector.broadcast %cst_193 : f32 to vector<8x4x32xf32>
    %429 = arith.select %427, %425, %428 : vector<8x4x32xi1>, vector<8x4x32xf32>
    %c0_194 = arith.constant 0 : index
    %c0_195 = arith.constant 0 : index
    %c0_196 = arith.constant 0 : index
    %430 = vector.load %arg11[%c0_194, %c0_195, %c0_196] : memref<8x4x32xf32, #tpu.memory_space<vmem>>, vector<8x4x32xf32>
    tpu.vector_store %arg11[%c0_194, %c0_195, %c0_196], %429 {strides = array<i32>} : memref<8x4x32xf32, #tpu.memory_space<vmem>>, vector<8x4x32xf32>,
    return
  }
}

</mosaic_0001>

<bundles_post_ra>
// kernel: tpu_custom_call.1
= control target key start
LH: loop header
LB: loop body
LE: loop exit
PB: predicated region body
PF: predicated region fallthrough
CT: control target
= control target key end

     0   :  { %16 = vsyncpa [#allocation5], 0  ;;  %s3534_s0 = inlined_call_operand.vmem [shape: f32[4,32], index: 0, kind: input, shape index: {}]   ;;  %s3535_s1 = inlined_call_operand.hbm [shape: f32[7,4,16], index: 1, kind: input, shape index: {}]   ;;  %s3536_s2 = inlined_call_operand.vmem [shape: s32[4,1], index: 2, kind: input, shape index: {}]   ;;  %s3537_s3 = inlined_call_operand.vmem [shape: f32[32,16], index: 3, kind: input, shape index: {}]   ;;  %s3538_s4 = inlined_call_operand.vmem [shape: f32[1,16], index: 4, kind: input, shape index: {}]   ;;  %s3539_s5 = inlined_call_operand.vmem [shape: f32[1,16], index: 5, kind: input, shape index: {}]   ;;  %s3540_s6 = inlined_call_operand.vmem [shape: f32[1,16], index: 6, kind: input, shape index: {}]   ;;  %s3541_s7 = inlined_call_operand.hbm [shape: f32[48,128], index: 7, kind: input, shape index: {}]   ;;  %s3542_s8 = inlined_call_operand.vmem [shape: f32[64,128], index: 8, kind: input, shape index: {}]   ;;  %s3543_s9 = inlined_call_operand.vmem [shape: f32[1,128], index: 9, kind: input, shape index: {}]   ;;  %s3544_s10 = inlined_call_operand.vmem [shape: f32[1,128], index: 10, kind: input, shape index: {}]   ;;  %s3545_s11 = inlined_call_operand.hbm [shape: f32[8,4,32], index: 11, kind: output, shape index: {}]  }
   0x1   :  { %17 = vsyncpa [#allocation8], 0 }
   0x2   :  { %18 = vsyncpa [#allocation6], 0  ;;  %s2918_s17 = smov [#allocation4]   ;;  %s2846_s21 = scalar_lea.hbm %s3535_s1, 448 }
   0x3   :  { %s26_s18 = sshll.u32 %s2918_s17, 4  ;;  %p2847_p0 = scmp.ne.s32.totalorder %s3535_s1, %s2846_s21  ;;  %s27_s18 = int_to_ptr.vmem [resolvable:$true] %s26_s18 }
   0x4   :  { %p2850_p1 = scmp.lt.u32.totalorder %s2846_s21, %s3535_s1 }
   0x6   :  { %p2852_p2 = pnand %p2850_p1, %p2847_p0 }
   0x8   :  { %2855 = shalt.err (!%p2852_p2)
}
   0x9   :  { %s2856_s26 = scalar_lea.vmem %s27_s18, 448  ;;  %p2861_p4 = scmp.lt.s32.totalorder %s27_s18, %s27_s18 }
   0xa   :  { %p2857_p3 = scmp.ne.s32.totalorder %s27_s18, %s2856_s26  ;;  %p2862_p5 = scmp.lt.s32.totalorder %s2856_s26, %s2856_s26 }
   0xc   :  { %p2863_p6 = por %p2862_p5, %p2861_p4 }
   0xe   :  { %p2864_p7 = pnand %p2863_p6, %p2857_p3 }
  0x10   :  { %2867 = shalt.err (!%p2864_p7)
}
  0x11   :  { %s2919_s27 = smov 64   ;;  %s2920_s28 = smov 4  }
  0x12   :  { %32 = dma.hbm_to_vmem [thread:$0]  %s3535_s1, 448, %s27_s18, [#allocation5], %s2919_s27, %s2919_s27, %s2920_s28  }
  0x13   :  { %s2921_s12 = smov [#allocation7]   ;;  %s2868_s16 = scalar_lea.hbm %s3541_s7, 768 }
  0x14   :  { %s48_s13 = sshll.u32 %s2921_s12, 4  ;;  %p2869_p8 = scmp.ne.s32.totalorder %s3541_s7, %s2868_s16  ;;  %s49_s13 = int_to_ptr.vmem [resolvable:$true] %s48_s13 }
  0x15   :  { %p2872_p9 = scmp.lt.u32.totalorder %s2868_s16, %s3541_s7 }
  0x17   :  { %p2874_p10 = pnand %p2872_p9, %p2869_p8 }
  0x19   :  { %2877 = shalt.err (!%p2874_p10)
}
  0x1a   :  { %s2878_s22 = scalar_lea.vmem %s49_s13, 768  ;;  %p2883_p12 = scmp.lt.s32.totalorder %s49_s13, %s49_s13 }
  0x1b   :  { %p2879_p11 = scmp.ne.s32.totalorder %s49_s13, %s2878_s22  ;;  %p2884_p13 = scmp.lt.s32.totalorder %s2878_s22, %s2878_s22 }
  0x1d   :  { %p2885_p0 = por %p2884_p13, %p2883_p12 }
  0x1f   :  { %p2886_p1 = pnand %p2885_p0, %p2879_p11 }
  0x21   :  { %2889 = shalt.err (!%p2886_p1)
}
  0x22   :  { %s2922_s1 = smov 128   ;;  %s2923_s18 = smov 8  }
  0x23   :  { %54 = dma.hbm_to_vmem [thread:$0]  %s3541_s7, 768, %s49_s13, [#allocation8], %s2922_s1, %s2922_s1, %s2923_s18  }
  0x24   :  { %2912 = dma.done.wait [#allocation5], 448  }
  0x25   :  { %2913 = vsyncadd [#allocation5], 4294966848 }
  0x26   :  { %2914 = dma.done.wait [#allocation8], 768  }
  0x27   :  { %2915 = vsyncadd [#allocation8], 4294966528  ;;  %v2924_v0 = vmov 0.0|0.0   ;;  %vm2925_vm0 = vmmov 0   ;;  %v2926_v1 = vmov 0.0   ;;  %v68_v2 = vld [vmem:[%s3537_s3] sm:$0xff]  ;;  %v220_v54 = vlaneseq }
  0x28   :  { %2525 = vmatprep.subr.bf16.mxu1 %v2924_v0  ;;  %2250 = vmatprep.mubr.msk.f32.mxu1 %vm2925_vm0, %v2926_v1  ;;  %v69_v3 = vld [vmem:[%s3537_s3 + $0x8] sm:$0xff]  ;;  %v70_v4 = vld [vmem:[%s3537_s3 + $0x10] sm:$0xff]  ;;  %v71_v6 = vld [vmem:[%s3537_s3 + $0x18] sm:$0xff]  ;;  %vm79_vm1 = vcmask 261120   ;;  %vm153_vm2 = vcmask 125952   ;;  %vm226_vm3 = vcmask 388224  }
  0x29   :  { %2540 = vmatprep.subr.bf16.mxu0 %v2924_v0  ;;  %2284 = vmatprep.mubr.msk.f32.mxu0 %vm2925_vm0, %v2926_v1  ;;  %v2526_v5 = vpack.c.bf16 %v69_v3, %v68_v2  ;;  %v2529_v7 = vpack.c.bf16 %v71_v6, %v70_v4  ;;  %v67_v8 = vld [vmem:[%s3534_s0] sm:$0xf]  ;;  %v192_v9 = vld [vmem:[#allocation7] sm:$0xff]  ;;  %v193_v10 = vld [vmem:[#allocation7 + $0x8] sm:$0xff]  ;;  %vm229_vm4 = vcmask 392192   ;;  %v221_v56 = vand.u32 127, %v220_v54 }
  0x2a   :  { %v3043_v11 = vpack.c.bf16 %v193_v10, %v192_v9  ;;  %v194_v12 = vld [vmem:[#allocation7 + $0x10] sm:$0xff]  ;;  %v195_v13 = vld [vmem:[#allocation7 + $0x18] sm:$0xff]  ;;  %v196_v15 = vld [vmem:[#allocation7 + $0x20] sm:$0xff]  ;;  %s2927_s21 = smov 32   ;;  %s2928_s3 = smov 48   ;;  %vm332_vm8 = vcmask 257024  }
  0x2b   :  { %2527 = vmatpush3.bf16.msra.mxu1 %v2526_v5  ;;  %v3047_v14 = vpack.c.bf16 %v195_v13, %v194_v12  ;;  %v197_v16 = vld [vmem:[#allocation7 + $0x28] sm:$0xff]  ;;  %v2071_v18 = vld [vmem:[%s3538_s4] ss:$0 sm:$0xff]  ;;  %vm222_vm5 = vcmp.ge.s32.totalorder %v221_v56, 64  ;;  %vm223_vm6 = vcmp.lt.s32.totalorder %v221_v56, 96  ;;  %vm334_vm9 = vcmask 519424  }
  0x2c   :  { %2528 = vmatprep.subr.bf16.mxu1 %v2924_v0  ;;  %v3051_v17 = vpack.c.bf16 %v197_v16, %v196_v15  ;;  %v2073_v42 = vld [vmem:[%s3539_s5] ss:$0 sm:$0xff]  ;;  %vm3084_vm7 = vmand %vm222_vm5, %vm223_vm6  ;;  %v199_v5 = vld [vmem:[%s3542_s8 + $0x8] sm:$0xff]  ;;  %vm337_vm10 = vcmask 523264  }
  0x2d   :  { %v2074_v44 = vld [vmem:[%s3540_s6] ss:$0 sm:$0xff]  ;;  %v200_v6 = vld [vmem:[%s3542_s8 + $0x10] sm:$0xff]  ;;  %v441_v9 = vld [vmem:[#allocation4] sm:$0xf] }
  0x2e   :  { %v3081_v48 = vld [vmem:[%s3543_s9] ss:$0 sm:$0xff]  ;;  %v203_v15 = vld [vmem:[%s3542_s8 + $0x28] sm:$0xff] }
  0x2f   :  { %2530 = vmatpush3.bf16.msra.mxu1 %v2529_v7  ;;  %v198_v4 = vld [vmem:[%s3542_s8] sm:$0xff] }
  0x30   :  { %2531 = vmatprep.subr.bf16.mxu1 %v2924_v0  ;;  %v3104_v7 = vpack.c.bf16 %v199_v5, %v198_v4  ;;  %v202_v13 = vld [vmem:[%s3542_s8 + $0x20] sm:$0xff] }
  0x31   :  { %v3123_v16 = vpack.c.bf16 %v203_v15, %v202_v13  ;;  %v1980_v57 = vld [vmem:[%s3536_s2] sm:$0xf]  ;;  %s2930_s2 = smov [#allocation9]  }
  0x32   :  { %2251 = vmatmul.mubr.msk.f32.vlgmr.msra.gmra.mrb[0].mxu1 %vm79_vm1, %v67_v8  ;;  %v201_v8 = vld [vmem:[%s3542_s8 + $0x18] sm:$0xff]  ;;  %2542 = vmatpush3.bf16.msra.mxu0 %v3104_v7  ;;  %vm1981_vm11 = vcmp.gt.s32.totalorder %v1980_v57, 0  ;;  %vm1984_vm12 = vcmp.gt.s32.totalorder %v1980_v57, 3  ;;  %vm1986_vm13 = vcmp.gt.s32.totalorder %v1980_v57, 5  ;;  %vm1988_vm14 = vcmp.gt.s32.totalorder %v1980_v57, 7  ;;  %s2058_s6 = sshll.u32 %s2930_s2, 4  ;;  %s2059_s6 = int_to_ptr.vmem [resolvable:$true] %s2058_s6 }
  0x33   :  { %2265 = vmatprep.mubr.msk.f32.mxu1 %vm2925_vm0, %v2926_v1  ;;  %2533 = vmatpush3.bf16.msra.mxu1 %v3043_v11  ;;  %v3111_v10 = vpack.c.bf16 %v201_v8, %v200_v6  ;;  %v881_v6 = vld [vmem:[#allocation4 + $0x8] sm:$0xf]  ;;  %vm1982_vm15 = vcmp.gt.s32.totalorder %v1980_v57, 1  ;;  %vm1985_vm1 = vcmp.gt.s32.totalorder %v1980_v57, 4  ;;  %p2895_p3 = scmp.lt.s32.totalorder %s2059_s6, %s2059_s6 }
  0x34   :  { %2534 = vmatprep.subr.bf16.mxu1 %v2924_v0  ;;  %2543 = vmatprep.subr.bf16.mxu0 %v2924_v0 }
  0x36   :  { %2545 = vmatpush3.bf16.msra.mxu0 %v3111_v10 }
  0x37   :  { %2536 = vmatpush3.bf16.msra.mxu1 %v3047_v14  ;;  %2546 = vmatprep.subr.bf16.mxu0 %v2924_v0 }
  0x38   :  { %2537 = vmatprep.subr.bf16.mxu1 %v2924_v0 }
  0x3a   :  { %2548 = vmatpush3.bf16.msra.mxu0 %v3123_v16 }
  0x3b   :  { %2539 = vmatpush3.bf16.msra.mxu1 %v3051_v17  ;;  %2549 = vmatprep.subr.bf16.mxu0 %v2924_v0 }
  0x3c   :  { %2552 = vmatprep.subr.bf16.mxu1 %v2924_v0 }
 0x105   :  { %v149_v19 = vpop.f32.mrb[0].mxu1 }
 0x106   :  { %v150_v20 = vadd.f32 %v2071_v18, %v149_v19  ;;  %v2252_v21 = vpop.f32.mrb[1].mxu1  ;;  %v204_v18 = vld [vmem:[%s3542_s8 + $0x30] sm:$0xff]  ;;  %v205_v19 = vld [vmem:[%s3542_s8 + $0x38] sm:$0xff] }
 0x108   :  { %v154_v22 = vsel %vm153_vm2, %v150_v20, 0.0 }
 0x109   :  { %v155_v23 = vrot.slane %v154_v22, 4 }
 0x10b   :  { %v156_v24 = vadd.f32 %v155_v23, %v154_v22 }
 0x10d   :  { %v157_v25 = vrot.slane %v156_v24, 2 }
 0x10f   :  { %v158_v26 = vadd.f32 %v157_v25, %v156_v24  ;;  %v661_v25 = vld [vmem:[#allocation4 + $0x4] sm:$0xf] }
 0x111   :  { %v159_v27 = vrot.slane %v158_v26, 1 }
 0x113   :  { %v160_v28 = vadd.f32 %v159_v27, %v158_v26 }
 0x115   :  { %v162_v29 = vmul.f32 0.25, %v160_v28  ;;  %v3167_v28 = vld [vmem:[%s3544_s10] ss:$0 sm:$0xff] }
 0x117   :  { %v163_v30 = vsub.f32 %v150_v20, %v162_v29  ;;  %v3133_v20 = vpack.c.bf16 %v205_v19, %v204_v18 }
 0x119   :  { %v164_v31 = vmul.f32 %v163_v30, %v163_v30  ;;  %2551 = vmatpush3.bf16.msra.mxu0 %v3133_v20 }
 0x11a   :  { %2561 = vmatprep.subr.bf16.mxu0 %v2924_v0 }
 0x11b   :  { %v165_v32 = vsel %vm153_vm2, %v164_v31, 0.0 }
 0x11c   :  { %v166_v33 = vrot.slane %v165_v32, 4 }
 0x11e   :  { %v167_v34 = vadd.f32 %v166_v33, %v165_v32 }
 0x120   :  { %v168_v35 = vrot.slane %v167_v34, 2 }
 0x122   :  { %v169_v36 = vadd.f32 %v168_v35, %v167_v34 }
 0x124   :  { %v170_v37 = vrot.slane %v169_v36, 1 }
 0x126   :  { %v171_v38 = vadd.f32 %v170_v37, %v169_v36 }
 0x128   :  { %v172_v39 = vmul.f32 0.25, %v171_v38 }
 0x12a   :  { %v173_v40 = vadd.f32 1e-05, %v172_v39 }
 0x12c   :  { %2714 = vrsqrt.f32 %v173_v40 }
 0x136   :  { %v2715_v41 = vpop.eup %2714 }
 0x137   :  { %v175_v43 = vmul.f32 %v2715_v41, %v163_v30 }
 0x139   :  { %v183_v45 = vmul.f32 %v2073_v42, %v175_v43 }
 0x13b   :  { %v191_v46 = vadd.f32 %v2074_v44, %v183_v45 }
 0x13d   :  { %225 = vst.msk [vmem:[#allocation2] sm:$0xf] %vm153_vm2, %v191_v46 }
 0x13e   :  { %227 = vst.msk [vmem:[#allocation2] sm:$0xf] %vm226_vm3, %v2926_v1 }
 0x145   :  { %v228_v47 = vld [vmem:[#allocation2] sm:$0xf] }
 0x146   :  { %2266 = vmatmul.mubr.msk.f32.vlgmr.msra.gmra.mrb[2].mxu1 %vm229_vm4, %v228_v47  ;;  %442 = vst.msk [vmem:[#allocation2] sm:$0xf] %vm153_vm2, %v441_v9 }
 0x147   :  { %2554 = vmatpush3.bf16.msra.mxu1 %v3043_v11  ;;  %2299 = vmatprep.mubr.msk.f32.mxu1 %vm2925_vm0, %v2926_v1 }
 0x148   :  { %2555 = vmatprep.subr.bf16.mxu1 %v2924_v0 }
 0x14b   :  { %2557 = vmatpush3.bf16.msra.mxu1 %v3047_v14 }
 0x14c   :  { %2558 = vmatprep.subr.bf16.mxu1 %v2924_v0 }
 0x14f   :  { %2560 = vmatpush3.bf16.msra.mxu1 %v3051_v17 }
 0x150   :  { %2573 = vmatprep.subr.bf16.mxu1 %v2924_v0 }
 0x219   :  { %v299_v49 = vpop.f32.mrb[2].mxu1 }
 0x21a   :  { %v300_v50 = vadd.f32 %v3081_v48, %v299_v49  ;;  %v2267_v51 = vpop.f32.mrb[3].mxu1 }
 0x21c   :  { %v2078_v52 = vmul.f32 -1.442695, %v300_v50 }
 0x21e   :  { %2716 = vpow2.f32 %v2078_v52 }
 0x21f   :  { %2718 = vtanh.f32 %v300_v50 }
 0x228   :  { %v2717_v53 = vpop.eup %2716 }
 0x229   :  { %v307_v55 = vadd.f32 1.0, %v2717_v53  ;;  %v2719_v58 = vpop.eup %2718 }
 0x22b   :  { %2720 = vrcp.f32 %v307_v55 }
 0x235   :  { %v2721_v59 = vpop.eup %2720 }
 0x236   :  { %v310_v60 = vsel %vm3084_vm7, %v2719_v58, %v2721_v59 }
 0x237   :  { %313 = vrot.lane.b32.xlu0 %v310_v60, %s2919_s27  ;;  %v311_v63 = vmul.f32 0.0, %v310_v60 }
 0x2a9   :  { %v314_v61 = vpop.permute.xlu0 %313 }
 0x2aa   :  { %v316_v62 = vmul.f32 %v314_v61, %v310_v60 }
 0x2ac   :  { %318 = vrot.lane.b32.xlu0 %v316_v62, %s2927_s21 }
 0x31e   :  { %v319_v2 = vpop.permute.xlu0 %318 }
 0x31f   :  { %v3092_v3 = vadd.f32 %v319_v2, %v311_v63 }
 0x321   :  { %2722 = vtanh.f32 %v3092_v3 }
 0x32b   :  { %v2723_v12 = vpop.eup %2722 }
 0x32c   :  { %324 = vrot.lane.b32.xlu1 %v2723_v12, %s2919_s27 }
 0x39e   :  { %v325_v21 = vpop.permute.xlu1 %324 }
 0x39f   :  { %v327_v22 = vmul.f32 %v325_v21, %v310_v60 }
 0x3a1   :  { %443 = vrot.lane.b32.xlu0 %v327_v22, %s2928_s3  ;;  %329 = vrot.lane.b32.xlu1 %v327_v22, %s2927_s21 }
 0x413   :  { %v444_v23 = vpop.permute.xlu0 %443  ;;  %v330_v24 = vpop.permute.xlu1 %329 }
 0x414   :  { %446 = vst.msk [vmem:[#allocation2] sm:$0xf] %vm226_vm3, %v444_v23 }
 0x415   :  { %333 = vst.msk [vmem:[#allocation3] sm:$0xf] %vm332_vm8, %v330_v24 }
 0x416   :  { %335 = vst.msk [vmem:[#allocation3] sm:$0xf] %vm334_vm9, %v2926_v1 }
 0x41b   :  { %v447_v26 = vld [vmem:[#allocation2] sm:$0xf] }
 0x41c   :  { %662 = vst.msk [vmem:[#allocation2] sm:$0xf] %vm153_vm2, %v661_v25  ;;  %2300 = vmatmul.mubr.msk.f32.vlgmr.msra.gmra.mrb[4].mxu1 %vm229_vm4, %v447_v26 }
 0x41d   :  { %v336_v27 = vld [vmem:[#allocation3] sm:$0xf]  ;;  %2575 = vmatpush3.bf16.msra.mxu1 %v3043_v11  ;;  %2333 = vmatprep.mubr.msk.f32.mxu1 %vm2925_vm0, %v2926_v1 }
 0x41e   :  { %2285 = vmatmul.mubr.msk.f32.vlgmr.msra.gmra.mrb[0].mxu0 %vm337_vm10, %v336_v27  ;;  %2576 = vmatprep.subr.bf16.mxu1 %v2924_v0 }
 0x41f   :  { %2563 = vmatpush3.bf16.msra.mxu0 %v3104_v7  ;;  %2318 = vmatprep.mubr.msk.f32.mxu0 %vm2925_vm0, %v2926_v1 }
 0x420   :  { %2564 = vmatprep.subr.bf16.mxu0 %v2924_v0 }
 0x421   :  { %2578 = vmatpush3.bf16.msra.mxu1 %v3047_v14 }
 0x422   :  { %2579 = vmatprep.subr.bf16.mxu1 %v2924_v0 }
 0x423   :  { %2566 = vmatpush3.bf16.msra.mxu0 %v3111_v10 }
 0x424   :  { %2567 = vmatprep.subr.bf16.mxu0 %v2924_v0 }
 0x425   :  { %2581 = vmatpush3.bf16.msra.mxu1 %v3051_v17 }
 0x426   :  { %2582 = vmatprep.subr.bf16.mxu1 %v2924_v0 }
 0x427   :  { %2569 = vmatpush3.bf16.msra.mxu0 %v3123_v16 }
 0x428   :  { %2570 = vmatprep.subr.bf16.mxu0 %v2924_v0 }
 0x42b   :  { %2572 = vmatpush3.bf16.msra.mxu0 %v3133_v20 }
 0x42c   :  { %2594 = vmatprep.subr.bf16.mxu0 %v2924_v0 }
 0x4ef   :  { %v517_v29 = vpop.f32.mrb[4].mxu1 }
 0x4f0   :  { %v518_v30 = vadd.f32 %v3081_v48, %v517_v29  ;;  %v2301_v32 = vpop.f32.mrb[5].mxu1 }
 0x4f1   :  { %v407_v31 = vpop.f32.mrb[0].mxu0 }
 0x4f2   :  { %v408_v33 = vadd.f32 %v3167_v28, %v407_v31  ;;  %v2286_v34 = vpop.f32.mrb[1].mxu0  ;;  %v2082_v35 = vmul.f32 -1.442695, %v518_v30 }
 0x4f4   :  { %v2080_v36 = vmul.f32 -1.442695, %v408_v33  ;;  %2724 = vpow2.f32 %v2082_v35 }
 0x4f6   :  { %2726 = vpow2.f32 %v2080_v36 }
 0x4f7   :  { %2728 = vtanh.f32 %v518_v30 }
 0x4f8   :  { %2730 = vtanh.f32 %v408_v33 }
 0x4fe   :  { %v2725_v37 = vpop.eup %2724 }
 0x4ff   :  { %v525_v39 = vadd.f32 1.0, %v2725_v37 }
 0x500   :  { %v2727_v38 = vpop.eup %2726 }
 0x501   :  { %v415_v40 = vadd.f32 1.0, %v2727_v38  ;;  %2732 = vrcp.f32 %v525_v39  ;;  %v2729_v41 = vpop.eup %2728 }
 0x502   :  { %v2731_v42 = vpop.eup %2730 }
 0x503   :  { %2734 = vrcp.f32 %v415_v40 }
 0x50b   :  { %v2733_v43 = vpop.eup %2732 }
 0x50c   :  { %v528_v45 = vsel %vm3084_vm7, %v2729_v41, %v2733_v43 }
 0x50d   :  { %v2735_v44 = vpop.eup %2734  ;;  %531 = vrot.lane.b32.xlu1 %v528_v45, %s2919_s27  ;;  %v529_v52 = vmul.f32 %v528_v45, %v3092_v3 }
 0x50e   :  { %v418_v46 = vsel %vm3084_vm7, %v2731_v42, %v2735_v44 }
 0x50f   :  { %421 = vrot.lane.b32.xlu0 %v418_v46, %s2919_s27  ;;  %v419_v54 = vmul.f32 0.0, %v418_v46 }
 0x57f   :  { %v532_v47 = vpop.permute.xlu1 %531 }
 0x580   :  { %v534_v49 = vmul.f32 %v532_v47, %v528_v45 }
 0x581   :  { %v422_v50 = vpop.permute.xlu0 %421 }
 0x582   :  { %v424_v51 = vmul.f32 %v422_v50, %v418_v46  ;;  %536 = vrot.lane.b32.xlu1 %v534_v49, %s2927_s21 }
 0x584   :  { %426 = vrot.lane.b32.xlu0 %v424_v51, %s2927_s21 }
 0x5f4   :  { %v537_v53 = vpop.permute.xlu1 %536 }
 0x5f5   :  { %v3180_v55 = vadd.f32 %v537_v53, %v529_v52 }
 0x5f6   :  { %v427_v56 = vpop.permute.xlu0 %426 }
 0x5f7   :  { %v3182_v58 = vadd.f32 %v427_v56, %v419_v54  ;;  %2736 = vtanh.f32 %v3180_v55 }
 0x5f9   :  { %2738 = vtanh.f32 %v3182_v58 }
 0x601   :  { %v2737_v59 = vpop.eup %2736 }
 0x602   :  { %542 = vrot.lane.b32.xlu1 %v2737_v59, %s2919_s27 }
 0x603   :  { %v2739_v60 = vpop.eup %2738 }
 0x604   :  { %432 = vrot.lane.b32.xlu0 %v2739_v60, %s2919_s27 }
 0x674   :  { %v543_v61 = vpop.permute.xlu1 %542 }
 0x675   :  { %v545_v62 = vmul.f32 %v543_v61, %v528_v45 }
 0x676   :  { %v433_v63 = vpop.permute.xlu0 %432 }
 0x677   :  { %663 = vrot.lane.b32.xlu0 %v545_v62, %s2928_s3  ;;  %547 = vrot.lane.b32.xlu1 %v545_v62, %s2927_s21  ;;  %v3190_v2 = vmul.f32 %v433_v63, %v418_v46 }
 0x67b   :  { %551 = vrot.lane.b32.xlu1 %v3190_v2, %s2919_s27 }
 0x6e9   :  { %v664_v3 = vpop.permute.xlu0 %663  ;;  %v548_v4 = vpop.permute.xlu1 %547 }
 0x6ea   :  { %666 = vst.msk [vmem:[#allocation2] sm:$0xf] %vm226_vm3, %v664_v3 }
 0x6eb   :  { %550 = vst.msk [vmem:[#allocation3] sm:$0xf] %vm332_vm8, %v548_v4 }
 0x6ed   :  { %v552_v5 = vpop.permute.xlu1 %551 }
 0x6ee   :  { %554 = vst.msk [vmem:[#allocation3] sm:$0xf] %vm334_vm9, %v552_v5 }
 0x6f1   :  { %v667_v8 = vld [vmem:[#allocation2] sm:$0xf] }
 0x6f2   :  { %882 = vst.msk [vmem:[#allocation2] sm:$0xf] %vm153_vm2, %v881_v6  ;;  %2334 = vmatmul.mubr.msk.f32.vlgmr.msra.gmra.mrb[6].mxu1 %vm229_vm4, %v667_v8 }
 0x6f3   :  { %2584 = vmatpush3.bf16.msra.mxu1 %v3104_v7  ;;  %2352 = vmatprep.mubr.msk.f32.mxu1 %vm2925_vm0, %v2926_v1 }
 0x6f4   :  { %2585 = vmatprep.subr.bf16.mxu1 %v2924_v0 }
 0x6f5   :  { %v555_v9 = vld [vmem:[#allocation3] sm:$0xf] }
 0x6f6   :  { %2319 = vmatmul.mubr.msk.f32.vlgmr.msra.gmra.mrb[2].mxu0 %vm337_vm10, %v555_v9 }
 0x6f7   :  { %2596 = vmatpush3.bf16.msra.mxu0 %v3043_v11  ;;  %2587 = vmatpush3.bf16.msra.mxu1 %v3111_v10 }
 0x6f8   :  { %2597 = vmatprep.subr.bf16.mxu0 %v2924_v0  ;;  %2588 = vmatprep.subr.bf16.mxu1 %v2924_v0 }
 0x6f9   :  { %2367 = vmatprep.mubr.msk.f32.mxu0 %vm2925_vm0, %v2926_v1 }
 0x6fb   :  { %2599 = vmatpush3.bf16.msra.mxu0 %v3047_v14  ;;  %2590 = vmatpush3.bf16.msra.mxu1 %v3123_v16 }
 0x6fc   :  { %2600 = vmatprep.subr.bf16.mxu0 %v2924_v0  ;;  %2591 = vmatprep.subr.bf16.mxu1 %v2924_v0 }
 0x6ff   :  { %2602 = vmatpush3.bf16.msra.mxu0 %v3051_v17  ;;  %2593 = vmatpush3.bf16.msra.mxu1 %v3133_v20 }
 0x700   :  { %2603 = vmatprep.subr.bf16.mxu0 %v2924_v0  ;;  %2615 = vmatprep.subr.bf16.mxu1 %v2924_v0 }
 0x7c5   :  { %v737_v12 = vpop.f32.mrb[6].mxu1 }
 0x7c6   :  { %v738_v13 = vadd.f32 %v3081_v48, %v737_v12  ;;  %v2335_v15 = vpop.f32.mrb[7].mxu1 }
 0x7c8   :  { %v2086_v18 = vmul.f32 -1.442695, %v738_v13 }
 0x7c9   :  { %v625_v19 = vpop.f32.mrb[2].mxu0 }
 0x7ca   :  { %2740 = vpow2.f32 %v2086_v18  ;;  %v626_v21 = vadd.f32 %v3167_v28, %v625_v19  ;;  %v2320_v22 = vpop.f32.mrb[3].mxu0 }
 0x7cc   :  { %v2084_v23 = vmul.f32 -1.442695, %v626_v21 }
 0x7ce   :  { %2742 = vpow2.f32 %v2084_v23 }
 0x7cf   :  { %2744 = vtanh.f32 %v738_v13 }
 0x7d4   :  { %v2741_v24 = vpop.eup %2740 }
 0x7d5   :  { %v745_v25 = vadd.f32 1.0, %v2741_v24 }
 0x7d7   :  { %2746 = vrcp.f32 %v745_v25 }
 0x7d8   :  { %v2743_v26 = vpop.eup %2742  ;;  %2748 = vtanh.f32 %v626_v21 }
 0x7d9   :  { %v633_v27 = vadd.f32 1.0, %v2743_v26  ;;  %v2745_v29 = vpop.eup %2744 }
 0x7db   :  { %2750 = vrcp.f32 %v633_v27 }
 0x7e1   :  { %v2747_v30 = vpop.eup %2746 }
 0x7e2   :  { %v748_v31 = vsel %vm3084_vm7, %v2745_v29, %v2747_v30  ;;  %v2749_v32 = vpop.eup %2748 }
 0x7e3   :  { %751 = vrot.lane.b32.xlu0 %v748_v31, %s2919_s27  ;;  %v749_v39 = vmul.f32 %v748_v31, %v3180_v55 }
 0x7e5   :  { %v2751_v33 = vpop.eup %2750 }
 0x7e6   :  { %v636_v34 = vsel %vm3084_vm7, %v2749_v32, %v2751_v33 }
 0x7e7   :  { %639 = vrot.lane.b32.xlu1 %v636_v34, %s2919_s27  ;;  %v637_v42 = vmul.f32 %v636_v34, %v3182_v58 }
 0x855   :  { %v752_v35 = vpop.permute.xlu0 %751 }
 0x856   :  { %v754_v36 = vmul.f32 %v752_v35, %v748_v31  ;;  %v1101_v35 = vld [vmem:[#allocation4 + $0xc] sm:$0xf] }
 0x858   :  { %756 = vrot.lane.b32.xlu0 %v754_v36, %s2927_s21 }
 0x859   :  { %v640_v37 = vpop.permute.xlu1 %639 }
 0x85a   :  { %v642_v38 = vmul.f32 %v640_v37, %v636_v34 }
 0x85c   :  { %644 = vrot.lane.b32.xlu1 %v642_v38, %s2927_s21 }
 0x8ca   :  { %v757_v40 = vpop.permute.xlu0 %756 }
 0x8cb   :  { %v3229_v41 = vadd.f32 %v757_v40, %v749_v39 }
 0x8cd   :  { %2752 = vtanh.f32 %v3229_v41 }
 0x8ce   :  { %v645_v43 = vpop.permute.xlu1 %644 }
 0x8cf   :  { %v3233_v44 = vadd.f32 %v645_v43, %v637_v42  ;;  %v1321_v43 = vld [vmem:[#allocation4 + $0x10] sm:$0xf] }
 0x8d1   :  { %2754 = vtanh.f32 %v3233_v44 }
 0x8d7   :  { %v2753_v45 = vpop.eup %2752 }
 0x8d8   :  { %762 = vrot.lane.b32.xlu0 %v2753_v45, %s2919_s27 }
 0x8db   :  { %v2755_v46 = vpop.eup %2754 }
 0x8dc   :  { %650 = vrot.lane.b32.xlu1 %v2755_v46, %s2919_s27 }
 0x94a   :  { %v763_v47 = vpop.permute.xlu0 %762 }
 0x94b   :  { %v765_v49 = vmul.f32 %v763_v47, %v748_v31 }
 0x94d   :  { %883 = vrot.lane.b32.xlu1 %v765_v49, %s2928_s3  ;;  %767 = vrot.lane.b32.xlu0 %v765_v49, %s2927_s21 }
 0x94e   :  { %v651_v50 = vpop.permute.xlu1 %650 }
 0x94f   :  { %v3240_v51 = vmul.f32 %v651_v50, %v636_v34 }
 0x951   :  { %771 = vrot.lane.b32.xlu0 %v3240_v51, %s2919_s27 }
 0x9bf   :  { %v884_v52 = vpop.permute.xlu1 %883  ;;  %v768_v53 = vpop.permute.xlu0 %767 }
 0x9c0   :  { %886 = vst.msk [vmem:[#allocation2] sm:$0xf] %vm226_vm3, %v884_v52 }
 0x9c1   :  { %770 = vst.msk [vmem:[#allocation3] sm:$0xf] %vm332_vm8, %v768_v53 }
 0x9c3   :  { %v772_v54 = vpop.permute.xlu0 %771 }
 0x9c4   :  { %774 = vst.msk [vmem:[#allocation3] sm:$0xf] %vm334_vm9, %v772_v54 }
 0x9c7   :  { %v887_v55 = vld [vmem:[#allocation2] sm:$0xf] }
 0x9c8   :  { %2368 = vmatmul.mubr.msk.f32.vlgmr.msra.gmra.mrb[4].mxu0 %vm229_vm4, %v887_v55  ;;  %1102 = vst.msk [vmem:[#allocation2] sm:$0xf] %vm153_vm2, %v1101_v35 }
 0x9c9   :  { %2605 = vmatpush3.bf16.msra.mxu0 %v3104_v7  ;;  %2386 = vmatprep.mubr.msk.f32.mxu0 %vm2925_vm0, %v2926_v1 }
 0x9ca   :  { %2606 = vmatprep.subr.bf16.mxu0 %v2924_v0 }
 0x9cb   :  { %v775_v56 = vld [vmem:[#allocation3] sm:$0xf] }
 0x9cc   :  { %2353 = vmatmul.mubr.msk.f32.vlgmr.msra.gmra.mrb[8].mxu1 %vm337_vm10, %v775_v56 }
 0x9cd   :  { %2617 = vmatpush3.bf16.msra.mxu1 %v3043_v11  ;;  %2608 = vmatpush3.bf16.msra.mxu0 %v3111_v10 }
 0x9ce   :  { %2618 = vmatprep.subr.bf16.mxu1 %v2924_v0  ;;  %2609 = vmatprep.subr.bf16.mxu0 %v2924_v0 }
 0x9cf   :  { %2401 = vmatprep.mubr.msk.f32.mxu1 %vm2925_vm0, %v2926_v1 }
 0x9d1   :  { %2620 = vmatpush3.bf16.msra.mxu1 %v3047_v14  ;;  %2611 = vmatpush3.bf16.msra.mxu0 %v3123_v16 }
 0x9d2   :  { %2621 = vmatprep.subr.bf16.mxu1 %v2924_v0  ;;  %2612 = vmatprep.subr.bf16.mxu0 %v2924_v0 }
 0x9d5   :  { %2623 = vmatpush3.bf16.msra.mxu1 %v3051_v17  ;;  %2614 = vmatpush3.bf16.msra.mxu0 %v3133_v20 }
 0x9d6   :  { %2624 = vmatprep.subr.bf16.mxu1 %v2924_v0  ;;  %2636 = vmatprep.subr.bf16.mxu0 %v2924_v0 }
 0xa9b   :  { %v957_v58 = vpop.f32.mrb[4].mxu0 }
 0xa9c   :  { %v958_v59 = vadd.f32 %v3081_v48, %v957_v58  ;;  %v2369_v60 = vpop.f32.mrb[5].mxu0 }
 0xa9e   :  { %v2090_v61 = vmul.f32 -1.442695, %v958_v59 }
 0xa9f   :  { %v845_v62 = vpop.f32.mrb[8].mxu1 }
 0xaa0   :  { %2756 = vpow2.f32 %v2090_v61  ;;  %v846_v63 = vadd.f32 %v3167_v28, %v845_v62  ;;  %v2354_v3 = vpop.f32.mrb[9].mxu1 }
 0xaa2   :  { %v2088_v4 = vmul.f32 -1.442695, %v846_v63 }
 0xaa4   :  { %2758 = vpow2.f32 %v2088_v4 }
 0xaa5   :  { %2760 = vtanh.f32 %v958_v59 }
 0xaaa   :  { %v2757_v5 = vpop.eup %2756 }
 0xaab   :  { %v965_v6 = vadd.f32 1.0, %v2757_v5 }
 0xaad   :  { %2762 = vrcp.f32 %v965_v6 }
 0xaae   :  { %v2759_v8 = vpop.eup %2758  ;;  %2764 = vtanh.f32 %v846_v63 }
 0xaaf   :  { %v853_v9 = vadd.f32 1.0, %v2759_v8  ;;  %v2761_v12 = vpop.eup %2760 }
 0xab1   :  { %2766 = vrcp.f32 %v853_v9 }
 0xab7   :  { %v2763_v13 = vpop.eup %2762 }
 0xab8   :  { %v968_v15 = vsel %vm3084_vm7, %v2761_v12, %v2763_v13  ;;  %v2765_v18 = vpop.eup %2764 }
 0xab9   :  { %971 = vrot.lane.b32.xlu1 %v968_v15, %s2919_s27  ;;  %v969_v26 = vmul.f32 %v968_v15, %v3229_v41 }
 0xabb   :  { %v2767_v19 = vpop.eup %2766 }
 0xabc   :  { %v856_v21 = vsel %vm3084_vm7, %v2765_v18, %v2767_v19 }
 0xabd   :  { %859 = vrot.lane.b32.xlu0 %v856_v21, %s2919_s27  ;;  %v857_v30 = vmul.f32 %v856_v21, %v3233_v44 }
 0xb2b   :  { %v972_v22 = vpop.permute.xlu1 %971 }
 0xb2c   :  { %v974_v23 = vmul.f32 %v972_v22, %v968_v15 }
 0xb2e   :  { %976 = vrot.lane.b32.xlu1 %v974_v23, %s2927_s21 }
 0xb2f   :  { %v860_v24 = vpop.permute.xlu0 %859 }
 0xb30   :  { %v862_v25 = vmul.f32 %v860_v24, %v856_v21 }
 0xb32   :  { %864 = vrot.lane.b32.xlu0 %v862_v25, %s2927_s21 }
 0xba0   :  { %v977_v27 = vpop.permute.xlu1 %976 }
 0xba1   :  { %v3278_v29 = vadd.f32 %v977_v27, %v969_v26 }
 0xba3   :  { %2768 = vtanh.f32 %v3278_v29 }
 0xba4   :  { %v865_v31 = vpop.permute.xlu0 %864 }
 0xba5   :  { %v3282_v32 = vadd.f32 %v865_v31, %v857_v30 }
 0xba7   :  { %2770 = vtanh.f32 %v3282_v32 }
 0xbad   :  { %v2769_v33 = vpop.eup %2768 }
 0xbae   :  { %982 = vrot.lane.b32.xlu1 %v2769_v33, %s2919_s27  ;;  %v1541_v33 = vld [vmem:[#allocation4 + $0x14] sm:$0xf] }
 0xbb1   :  { %v2771_v34 = vpop.eup %2770 }
 0xbb2   :  { %870 = vrot.lane.b32.xlu0 %v2771_v34, %s2919_s27 }
 0xc20   :  { %v983_v36 = vpop.permute.xlu1 %982 }
 0xc21   :  { %v985_v37 = vmul.f32 %v983_v36, %v968_v15 }
 0xc23   :  { %987 = vrot.lane.b32.xlu1 %v985_v37, %s2927_s21  ;;  %1103 = vrot.lane.b32.xlu0 %v985_v37, %s2928_s3 }
 0xc24   :  { %v871_v38 = vpop.permute.xlu0 %870 }
 0xc25   :  { %v3290_v39 = vmul.f32 %v871_v38, %v856_v21 }
 0xc27   :  { %991 = vrot.lane.b32.xlu1 %v3290_v39, %s2919_s27 }
 0xc95   :  { %v988_v40 = vpop.permute.xlu1 %987  ;;  %v1104_v41 = vpop.permute.xlu0 %1103 }
 0xc96   :  { %990 = vst.msk [vmem:[#allocation3] sm:$0xf] %vm332_vm8, %v988_v40 }
 0xc97   :  { %1106 = vst.msk [vmem:[#allocation2] sm:$0xf] %vm226_vm3, %v1104_v41 }
 0xc99   :  { %v992_v42 = vpop.permute.xlu1 %991 }
 0xc9a   :  { %994 = vst.msk [vmem:[#allocation3] sm:$0xf] %vm334_vm9, %v992_v42 }
 0xc9e   :  { %v1107_v44 = vld [vmem:[#allocation2] sm:$0xf] }
 0xc9f   :  { %2402 = vmatmul.mubr.msk.f32.vlgmr.msra.gmra.mrb[10].mxu1 %vm229_vm4, %v1107_v44  ;;  %1322 = vst.msk [vmem:[#allocation2] sm:$0xf] %vm153_vm2, %v1321_v43 }
 0xca0   :  { %2626 = vmatpush3.bf16.msra.mxu1 %v3104_v7  ;;  %2420 = vmatprep.mubr.msk.f32.mxu1 %vm2925_vm0, %v2926_v1 }
 0xca1   :  { %2627 = vmatprep.subr.bf16.mxu1 %v2924_v0  ;;  %v995_v45 = vld [vmem:[#allocation3] sm:$0xf] }
 0xca2   :  { %2387 = vmatmul.mubr.msk.f32.vlgmr.msra.gmra.mrb[6].mxu0 %vm337_vm10, %v995_v45 }
 0xca3   :  { %2638 = vmatpush3.bf16.msra.mxu0 %v3043_v11  ;;  %2435 = vmatprep.mubr.msk.f32.mxu0 %vm2925_vm0, %v2926_v1 }
 0xca4   :  { %2629 = vmatpush3.bf16.msra.mxu1 %v3111_v10  ;;  %2639 = vmatprep.subr.bf16.mxu0 %v2924_v0 }
 0xca5   :  { %2630 = vmatprep.subr.bf16.mxu1 %v2924_v0 }
 0xca7   :  { %2641 = vmatpush3.bf16.msra.mxu0 %v3047_v14 }
 0xca8   :  { %2632 = vmatpush3.bf16.msra.mxu1 %v3123_v16  ;;  %2642 = vmatprep.subr.bf16.mxu0 %v2924_v0 }
 0xca9   :  { %2633 = vmatprep.subr.bf16.mxu1 %v2924_v0 }
 0xcab   :  { %2644 = vmatpush3.bf16.msra.mxu0 %v3051_v17 }
 0xcac   :  { %2635 = vmatpush3.bf16.msra.mxu1 %v3133_v20  ;;  %2645 = vmatprep.subr.bf16.mxu0 %v2924_v0 }
 0xcad   :  { %2657 = vmatprep.subr.bf16.mxu1 %v2924_v0 }
 0xd72   :  { %v1177_v46 = vpop.f32.mrb[10].mxu1 }
 0xd73   :  { %v1178_v47 = vadd.f32 %v3081_v48, %v1177_v46  ;;  %v2403_v49 = vpop.f32.mrb[11].mxu1 }
 0xd75   :  { %v2094_v50 = vmul.f32 -1.442695, %v1178_v47  ;;  %v1065_v52 = vpop.f32.mrb[6].mxu0 }
 0xd76   :  { %v1066_v53 = vadd.f32 %v3167_v28, %v1065_v52  ;;  %v2388_v54 = vpop.f32.mrb[7].mxu0 }
 0xd77   :  { %2772 = vpow2.f32 %v2094_v50 }
 0xd78   :  { %v2092_v55 = vmul.f32 -1.442695, %v1066_v53 }
 0xd7a   :  { %2774 = vpow2.f32 %v2092_v55 }
 0xd7b   :  { %2776 = vtanh.f32 %v1178_v47 }
 0xd81   :  { %v2773_v56 = vpop.eup %2772 }
 0xd82   :  { %v1185_v58 = vadd.f32 1.0, %v2773_v56 }
 0xd84   :  { %2778 = vrcp.f32 %v1185_v58  ;;  %v2775_v59 = vpop.eup %2774 }
 0xd85   :  { %v1073_v60 = vadd.f32 1.0, %v2775_v59  ;;  %2780 = vtanh.f32 %v1066_v53  ;;  %v2777_v61 = vpop.eup %2776 }
 0xd87   :  { %2782 = vrcp.f32 %v1073_v60 }
 0xd8e   :  { %v2779_v62 = vpop.eup %2778 }
 0xd8f   :  { %v1188_v63 = vsel %vm3084_vm7, %v2777_v61, %v2779_v62  ;;  %v2781_v3 = vpop.eup %2780 }
 0xd90   :  { %1191 = vrot.lane.b32.xlu0 %v1188_v63, %s2919_s27  ;;  %v1189_v13 = vmul.f32 %v1188_v63, %v3278_v29 }
 0xd91   :  { %v2783_v4 = vpop.eup %2782 }
 0xd92   :  { %v1076_v5 = vsel %vm3084_vm7, %v2781_v3, %v2783_v4 }
 0xd93   :  { %1079 = vrot.lane.b32.xlu1 %v1076_v5, %s2919_s27  ;;  %v1077_v19 = vmul.f32 %v1076_v5, %v3282_v32 }
 0xe02   :  { %v1192_v6 = vpop.permute.xlu0 %1191 }
 0xe03   :  { %v1194_v8 = vmul.f32 %v1192_v6, %v1188_v63 }
 0xe05   :  { %1196 = vrot.lane.b32.xlu0 %v1194_v8, %s2927_s21  ;;  %v1080_v9 = vpop.permute.xlu1 %1079 }
 0xe06   :  { %v1082_v12 = vmul.f32 %v1080_v9, %v1076_v5 }
 0xe08   :  { %1084 = vrot.lane.b32.xlu1 %v1082_v12, %s2927_s21 }
 0xe77   :  { %v1197_v15 = vpop.permute.xlu0 %1196 }
 0xe78   :  { %v3329_v18 = vadd.f32 %v1197_v15, %v1189_v13 }
 0xe7a   :  { %2784 = vtanh.f32 %v3329_v18  ;;  %v1085_v21 = vpop.permute.xlu1 %1084 }
 0xe7b   :  { %v3333_v22 = vadd.f32 %v1085_v21, %v1077_v19 }
 0xe7d   :  { %2786 = vtanh.f32 %v3333_v22 }
 0xe84   :  { %v2785_v23 = vpop.eup %2784 }
 0xe85   :  { %1202 = vrot.lane.b32.xlu0 %v2785_v23, %s2919_s27  ;;  %v1761_v23 = vld [vmem:[#allocation4 + $0x18] sm:$0xf] }
 0xe87   :  { %v2787_v24 = vpop.eup %2786 }
 0xe88   :  { %1090 = vrot.lane.b32.xlu1 %v2787_v24, %s2919_s27 }
 0xef7   :  { %v1203_v25 = vpop.permute.xlu0 %1202 }
 0xef8   :  { %v1205_v26 = vmul.f32 %v1203_v25, %v1188_v63 }
 0xefa   :  { %1323 = vrot.lane.b32.xlu1 %v1205_v26, %s2928_s3  ;;  %1207 = vrot.lane.b32.xlu0 %v1205_v26, %s2927_s21  ;;  %v1091_v27 = vpop.permute.xlu1 %1090 }
 0xefb   :  { %v3340_v29 = vmul.f32 %v1091_v27, %v1076_v5 }
 0xefe   :  { %1211 = vrot.lane.b32.xlu0 %v3340_v29, %s2919_s27 }
 0xf6c   :  { %v1324_v30 = vpop.permute.xlu1 %1323  ;;  %v1208_v31 = vpop.permute.xlu0 %1207 }
 0xf6d   :  { %1326 = vst.msk [vmem:[#allocation2] sm:$0xf] %vm226_vm3, %v1324_v30 }
 0xf6e   :  { %1210 = vst.msk [vmem:[#allocation3] sm:$0xf] %vm332_vm8, %v1208_v31 }
 0xf70   :  { %v1212_v32 = vpop.permute.xlu0 %1211 }
 0xf71   :  { %1214 = vst.msk [vmem:[#allocation3] sm:$0xf] %vm334_vm9, %v1212_v32 }
 0xf74   :  { %v1327_v34 = vld [vmem:[#allocation2] sm:$0xf] }
 0xf75   :  { %2436 = vmatmul.mubr.msk.f32.vlgmr.msra.gmra.mrb[8].mxu0 %vm229_vm4, %v1327_v34  ;;  %1542 = vst.msk [vmem:[#allocation2] sm:$0xf] %vm153_vm2, %v1541_v33 }
 0xf76   :  { %2647 = vmatpush3.bf16.msra.mxu0 %v3104_v7  ;;  %2454 = vmatprep.mubr.msk.f32.mxu0 %vm2925_vm0, %v2926_v1 }
 0xf77   :  { %2648 = vmatprep.subr.bf16.mxu0 %v2924_v0 }
 0xf78   :  { %v1215_v35 = vld [vmem:[#allocation3] sm:$0xf] }
 0xf79   :  { %2421 = vmatmul.mubr.msk.f32.vlgmr.msra.gmra.mrb[12].mxu1 %vm337_vm10, %v1215_v35 }
 0xf7a   :  { %2659 = vmatpush3.bf16.msra.mxu1 %v3043_v11  ;;  %2650 = vmatpush3.bf16.msra.mxu0 %v3111_v10 }
 0xf7b   :  { %2660 = vmatprep.subr.bf16.mxu1 %v2924_v0  ;;  %2651 = vmatprep.subr.bf16.mxu0 %v2924_v0 }
 0xf7c   :  { %2469 = vmatprep.mubr.msk.f32.mxu1 %vm2925_vm0, %v2926_v1 }
 0xf7e   :  { %2662 = vmatpush3.bf16.msra.mxu1 %v3047_v14  ;;  %2653 = vmatpush3.bf16.msra.mxu0 %v3123_v16 }
 0xf7f   :  { %2663 = vmatprep.subr.bf16.mxu1 %v2924_v0  ;;  %2654 = vmatprep.subr.bf16.mxu0 %v2924_v0 }
 0xf82   :  { %2665 = vmatpush3.bf16.msra.mxu1 %v3051_v17  ;;  %2656 = vmatpush3.bf16.msra.mxu0 %v3133_v20 }
 0xf83   :  { %2666 = vmatprep.subr.bf16.mxu1 %v2924_v0  ;;  %2678 = vmatprep.subr.bf16.mxu0 %v2924_v0 }
0x1048   :  { %v1397_v36 = vpop.f32.mrb[8].mxu0 }
0x1049   :  { %v1398_v37 = vadd.f32 %v3081_v48, %v1397_v36  ;;  %v2437_v38 = vpop.f32.mrb[9].mxu0 }
0x104b   :  { %v2098_v40 = vmul.f32 -1.442695, %v1398_v37 }
0x104c   :  { %v1285_v41 = vpop.f32.mrb[12].mxu1 }
0x104d   :  { %2788 = vpow2.f32 %v2098_v40  ;;  %v1286_v42 = vadd.f32 %v3167_v28, %v1285_v41  ;;  %v2422_v43 = vpop.f32.mrb[13].mxu1 }
0x104f   :  { %v2096_v44 = vmul.f32 -1.442695, %v1286_v42 }
0x1051   :  { %2790 = vpow2.f32 %v2096_v44 }
0x1052   :  { %2792 = vtanh.f32 %v1398_v37 }
0x1057   :  { %v2789_v45 = vpop.eup %2788 }
0x1058   :  { %v1405_v46 = vadd.f32 1.0, %v2789_v45 }
0x105a   :  { %2794 = vrcp.f32 %v1405_v46 }
0x105b   :  { %v2791_v47 = vpop.eup %2790  ;;  %2796 = vtanh.f32 %v1286_v42 }
0x105c   :  { %v1293_v49 = vadd.f32 1.0, %v2791_v47  ;;  %v2793_v50 = vpop.eup %2792 }
0x105e   :  { %2798 = vrcp.f32 %v1293_v49 }
0x1064   :  { %v2795_v52 = vpop.eup %2794 }
0x1065   :  { %v1408_v53 = vsel %vm3084_vm7, %v2793_v50, %v2795_v52  ;;  %v2797_v54 = vpop.eup %2796 }
0x1066   :  { %1411 = vrot.lane.b32.xlu1 %v1408_v53, %s2919_s27  ;;  %v1409_v62 = vmul.f32 %v1408_v53, %v3329_v18 }
0x1068   :  { %v2799_v55 = vpop.eup %2798 }
0x1069   :  { %v1296_v56 = vsel %vm3084_vm7, %v2797_v54, %v2799_v55 }
0x106a   :  { %1299 = vrot.lane.b32.xlu0 %v1296_v56, %s2919_s27  ;;  %v1297_v4 = vmul.f32 %v1296_v56, %v3333_v22 }
0x10d8   :  { %v1412_v58 = vpop.permute.xlu1 %1411 }
0x10d9   :  { %v1414_v59 = vmul.f32 %v1412_v58, %v1408_v53 }
0x10db   :  { %1416 = vrot.lane.b32.xlu1 %v1414_v59, %s2927_s21 }
0x10dc   :  { %v1300_v60 = vpop.permute.xlu0 %1299 }
0x10dd   :  { %v1302_v61 = vmul.f32 %v1300_v60, %v1296_v56 }
0x10df   :  { %1304 = vrot.lane.b32.xlu0 %v1302_v61, %s2927_s21 }
0x114d   :  { %v1417_v63 = vpop.permute.xlu1 %1416 }
0x114e   :  { %v3379_v3 = vadd.f32 %v1417_v63, %v1409_v62 }
0x1150   :  { %2800 = vtanh.f32 %v3379_v3 }
0x1151   :  { %v1305_v5 = vpop.permute.xlu0 %1304 }
0x1152   :  { %v3383_v6 = vadd.f32 %v1305_v5, %v1297_v4 }
0x1154   :  { %2802 = vtanh.f32 %v3383_v6 }
0x115a   :  { %v2801_v8 = vpop.eup %2800 }
0x115b   :  { %1422 = vrot.lane.b32.xlu1 %v2801_v8, %s2919_s27 }
0x115e   :  { %v2803_v9 = vpop.eup %2802 }
0x115f   :  { %1310 = vrot.lane.b32.xlu0 %v2803_v9, %s2919_s27 }
0x11cd   :  { %v1423_v12 = vpop.permute.xlu1 %1422 }
0x11ce   :  { %v1425_v13 = vmul.f32 %v1423_v12, %v1408_v53 }
0x11d0   :  { %1427 = vrot.lane.b32.xlu1 %v1425_v13, %s2927_s21  ;;  %1543 = vrot.lane.b32.xlu0 %v1425_v13, %s2928_s3 }
0x11d1   :  { %v1311_v15 = vpop.permute.xlu0 %1310 }
0x11d2   :  { %v3390_v18 = vmul.f32 %v1311_v15, %v1296_v56 }
0x11d4   :  { %1431 = vrot.lane.b32.xlu1 %v3390_v18, %s2919_s27 }
0x1242   :  { %v1428_v19 = vpop.permute.xlu1 %1427  ;;  %v1544_v21 = vpop.permute.xlu0 %1543 }
0x1243   :  { %1430 = vst.msk [vmem:[#allocation3] sm:$0xf] %vm332_vm8, %v1428_v19 }
0x1244   :  { %1546 = vst.msk [vmem:[#allocation2] sm:$0xf] %vm226_vm3, %v1544_v21 }
0x1246   :  { %v1432_v22 = vpop.permute.xlu1 %1431 }
0x1247   :  { %1434 = vst.msk [vmem:[#allocation3] sm:$0xf] %vm334_vm9, %v1432_v22 }
0x124b   :  { %v1547_v24 = vld [vmem:[#allocation2] sm:$0xf] }
0x124c   :  { %2470 = vmatmul.mubr.msk.f32.vlgmr.msra.gmra.mrb[14].mxu1 %vm229_vm4, %v1547_v24  ;;  %1762 = vst.msk [vmem:[#allocation2] sm:$0xf] %vm153_vm2, %v1761_v23 }
0x124d   :  { %2668 = vmatpush3.bf16.msra.mxu1 %v3104_v7  ;;  %2488 = vmatprep.mubr.msk.f32.mxu1 %vm2925_vm0, %v2926_v1 }
0x124e   :  { %2669 = vmatprep.subr.bf16.mxu1 %v2924_v0  ;;  %v1435_v25 = vld [vmem:[#allocation3] sm:$0xf] }
0x124f   :  { %2455 = vmatmul.mubr.msk.f32.vlgmr.msra.gmra.mrb[10].mxu0 %vm337_vm10, %v1435_v25 }
0x1250   :  { %2680 = vmatpush3.bf16.msra.mxu0 %v3043_v11  ;;  %2503 = vmatprep.mubr.msk.f32.mxu0 %vm2925_vm0, %v2926_v1 }
0x1251   :  { %2671 = vmatpush3.bf16.msra.mxu1 %v3111_v10  ;;  %2681 = vmatprep.subr.bf16.mxu0 %v2924_v0 }
0x1252   :  { %2672 = vmatprep.subr.bf16.mxu1 %v2924_v0 }
0x1254   :  { %2683 = vmatpush3.bf16.msra.mxu0 %v3047_v14 }
0x1255   :  { %2674 = vmatpush3.bf16.msra.mxu1 %v3123_v16  ;;  %2684 = vmatprep.subr.bf16.mxu0 %v2924_v0 }
0x1256   :  { %2675 = vmatprep.subr.bf16.mxu1 %v2924_v0 }
0x1258   :  { %2686 = vmatpush3.bf16.msra.mxu0 %v3051_v17 }
0x1259   :  { %2677 = vmatpush3.bf16.msra.mxu1 %v3133_v20  ;;  %2687 = vmatprep.subr.bf16.mxu0 %v2924_v0 }
0x131f   :  { %v1617_v11 = vpop.f32.mrb[14].mxu1 }
0x1320   :  { %v1618_v26 = vadd.f32 %v3081_v48, %v1617_v11  ;;  %v2471_v27 = vpop.f32.mrb[15].mxu1 }
0x1322   :  { %v2102_v30 = vmul.f32 -1.442695, %v1618_v26  ;;  %v1505_v31 = vpop.f32.mrb[10].mxu0 }
0x1323   :  { %v1506_v14 = vadd.f32 %v3167_v28, %v1505_v31  ;;  %v2456_v32 = vpop.f32.mrb[11].mxu0 }
0x1324   :  { %2804 = vpow2.f32 %v2102_v30 }
0x1325   :  { %v2100_v33 = vmul.f32 -1.442695, %v1506_v14 }
0x1327   :  { %2806 = vpow2.f32 %v2100_v33 }
0x1328   :  { %2808 = vtanh.f32 %v1618_v26 }
0x132e   :  { %v2805_v34 = vpop.eup %2804 }
0x132f   :  { %v1625_v35 = vadd.f32 1.0, %v2805_v34 }
0x1331   :  { %2810 = vrcp.f32 %v1625_v35  ;;  %v2807_v17 = vpop.eup %2806 }
0x1332   :  { %v1513_v36 = vadd.f32 1.0, %v2807_v17  ;;  %2812 = vtanh.f32 %v1506_v14  ;;  %v2809_v37 = vpop.eup %2808 }
0x1334   :  { %2814 = vrcp.f32 %v1513_v36 }
0x133b   :  { %v2811_v38 = vpop.eup %2810 }
0x133c   :  { %v1628_v48 = vsel %vm3084_vm7, %v2809_v37, %v2811_v38  ;;  %v2813_v40 = vpop.eup %2812 }
0x133d   :  { %1631 = vrot.lane.b32.xlu0 %v1628_v48, %s2919_s27  ;;  %v1629_v47 = vmul.f32 %v1628_v48, %v3379_v3 }
0x133e   :  { %v2815_v41 = vpop.eup %2814 }
0x133f   :  { %v1516_v42 = vsel %vm3084_vm7, %v2813_v40, %v2815_v41 }
0x1340   :  { %1519 = vrot.lane.b32.xlu1 %v1516_v42, %s2919_s27  ;;  %v1517_v52 = vmul.f32 %v1516_v42, %v3383_v6 }
0x13af   :  { %v1632_v43 = vpop.permute.xlu0 %1631 }
0x13b0   :  { %v1634_v44 = vmul.f32 %v1632_v43, %v1628_v48 }
0x13b2   :  { %1636 = vrot.lane.b32.xlu0 %v1634_v44, %s2927_s21  ;;  %v1520_v45 = vpop.permute.xlu1 %1519 }
0x13b3   :  { %v1522_v46 = vmul.f32 %v1520_v45, %v1516_v42  ;;  %v2845_v45 = vld [vmem:[%s3544_s10] ss:$0 sm:$0xff] }
0x13b5   :  { %1524 = vrot.lane.b32.xlu1 %v1522_v46, %s2927_s21 }
0x1424   :  { %v1637_v49 = vpop.permute.xlu0 %1636 }
0x1425   :  { %v3428_v50 = vadd.f32 %v1637_v49, %v1629_v47 }
0x1427   :  { %2816 = vtanh.f32 %v3428_v50  ;;  %v1525_v53 = vpop.permute.xlu1 %1524 }
0x1428   :  { %v3432_v54 = vadd.f32 %v1525_v53, %v1517_v52 }
0x142a   :  { %2818 = vtanh.f32 %v3432_v54 }
0x1431   :  { %v2817_v55 = vpop.eup %2816 }
0x1432   :  { %1642 = vrot.lane.b32.xlu0 %v2817_v55, %s2919_s27 }
0x1434   :  { %v2819_v56 = vpop.eup %2818 }
0x1435   :  { %1530 = vrot.lane.b32.xlu1 %v2819_v56, %s2919_s27  ;;  %v2929_v56 = vmov 0  }
0x1436   :  { %2712 = vset.pattern.permute.xlu0 %v2929_v56  ;;  %2713 = vset.pattern.permute.xlu1 %v2929_v56 }
0x14a4   :  { %v1643_v58 = vpop.permute.xlu0 %1642 }
0x14a5   :  { %v1645_v59 = vmul.f32 %v1643_v58, %v1628_v48 }
0x14a7   :  { %1763 = vrot.lane.b32.xlu1 %v1645_v59, %s2928_s3  ;;  %1647 = vrot.lane.b32.xlu0 %v1645_v59, %s2927_s21  ;;  %v1531_v60 = vpop.permute.xlu1 %1530 }
0x14a8   :  { %v3439_v61 = vmul.f32 %v1531_v60, %v1516_v42  ;;  %v1997_v60 = vsel %vm1981_vm11, 1, %v2929_v56 }
0x14ab   :  { %1651 = vrot.lane.b32.xlu0 %v3439_v61, %s2919_s27 }
0x1519   :  { %v1764_v62 = vpop.permute.xlu1 %1763  ;;  %v1648_v63 = vpop.permute.xlu0 %1647 }
0x151a   :  { %1766 = vst.msk [vmem:[#allocation2] sm:$0xf] %vm226_vm3, %v1764_v62  ;;  %v2000_v62 = vsel %vm1984_vm12, 1, %v2929_v56  ;;  %vm1987_vm3 = vcmp.gt.s32.totalorder %v1980_v57, 6 }
0x151b   :  { %1650 = vst.msk [vmem:[#allocation3] sm:$0xf] %vm332_vm8, %v1648_v63 }
0x151d   :  { %v1652_v3 = vpop.permute.xlu0 %1651 }
0x151e   :  { %1654 = vst.msk [vmem:[#allocation3] sm:$0xf] %vm334_vm9, %v1652_v3 }
0x1521   :  { %v1767_v4 = vld [vmem:[#allocation2] sm:$0xf] }
0x1522   :  { %2504 = vmatmul.mubr.msk.f32.vlgmr.msra.gmra.mrb[12].mxu0 %vm229_vm4, %v1767_v4 }
0x1523   :  { %2689 = vmatpush3.bf16.msra.mxu0 %v3104_v7  ;;  %2522 = vmatprep.mubr.msk.f32.mxu0 %vm2925_vm0, %v2926_v1  ;;  %v2844_v1 = vld [vmem:[%s3543_s9] ss:$0 sm:$0xff]  ;;  %vm1983_vm0 = vcmp.gt.s32.totalorder %v1980_v57, 2 }
0x1524   :  { %2690 = vmatprep.subr.bf16.mxu0 %v2924_v0 }
0x1525   :  { %v1655_v5 = vld [vmem:[#allocation3] sm:$0xf] }
0x1526   :  { %2489 = vmatmul.mubr.msk.f32.vlgmr.msra.gmra.mrb[16].mxu1 %vm337_vm10, %v1655_v5 }
0x1527   :  { %2692 = vmatpush3.bf16.msra.mxu0 %v3111_v10 }
0x1528   :  { %2693 = vmatprep.subr.bf16.mxu0 %v2924_v0 }
0x152b   :  { %2695 = vmatpush3.bf16.msra.mxu0 %v3123_v16 }
0x152c   :  { %2696 = vmatprep.subr.bf16.mxu0 %v2924_v0 }
0x152f   :  { %2698 = vmatpush3.bf16.msra.mxu0 %v3133_v20 }
0x15f5   :  { %v1837_v6 = vpop.f32.mrb[12].mxu0 }
0x15f6   :  { %v1838_v7 = vadd.f32 %v2844_v1, %v1837_v6  ;;  %v2505_v8 = vpop.f32.mrb[13].mxu0 }
0x15f7   :  { %v1998_v8 = vsel %vm1982_vm15, 1, %v2929_v56 }
0x15f8   :  { %v2106_v9 = vmul.f32 -1.442695, %v1838_v7 }
0x15f9   :  { %v1725_v12 = vpop.f32.mrb[16].mxu1 }
0x15fa   :  { %2820 = vpow2.f32 %v2106_v9  ;;  %v1726_v10 = vadd.f32 %v3167_v28, %v1725_v12  ;;  %v2490_v13 = vpop.f32.mrb[17].mxu1  ;;  %v1999_v9 = vsel %vm1983_vm0, 1, %v2929_v56 }
0x15fc   :  { %v2104_v15 = vmul.f32 -1.442695, %v1726_v10 }
0x15fe   :  { %2822 = vpow2.f32 %v2104_v15  ;;  %v2001_v15 = vsel %vm1985_vm1, 1, %v2929_v56 }
0x15ff   :  { %2824 = vtanh.f32 %v1838_v7 }
0x1604   :  { %v2821_v16 = vpop.eup %2820 }
0x1605   :  { %v1845_v19 = vadd.f32 1.0, %v2821_v16  ;;  %v2003_v16 = vsel %vm1987_vm3, 1, %v2929_v56 }
0x1607   :  { %2826 = vrcp.f32 %v1845_v19 }
0x1608   :  { %v2823_v0 = vpop.eup %2822  ;;  %2828 = vtanh.f32 %v1726_v10 }
0x1609   :  { %v1733_v20 = vadd.f32 1.0, %v2823_v0  ;;  %v2825_v21 = vpop.eup %2824 }
0x160b   :  { %2830 = vrcp.f32 %v1733_v20 }
0x1611   :  { %v2827_v22 = vpop.eup %2826 }
0x1612   :  { %v1848_v23 = vsel %vm3084_vm7, %v2825_v21, %v2827_v22  ;;  %v2829_v24 = vpop.eup %2828 }
0x1613   :  { %1851 = vrot.lane.b32.xlu1 %v1848_v23, %s2919_s27  ;;  %v1849_v31 = vmul.f32 %v1848_v23, %v3428_v50 }
0x1615   :  { %v2831_v28 = vpop.eup %2830 }
0x1616   :  { %v1736_v25 = vsel %vm3084_vm7, %v2829_v24, %v2831_v28 }
0x1617   :  { %1739 = vrot.lane.b32.xlu0 %v1736_v25, %s2919_s27  ;;  %v1737_v33 = vmul.f32 %v1736_v25, %v3432_v54 }
0x1685   :  { %v1852_v11 = vpop.permute.xlu1 %1851 }
0x1686   :  { %v1854_v26 = vmul.f32 %v1852_v11, %v1848_v23 }
0x1688   :  { %1856 = vrot.lane.b32.xlu1 %v1854_v26, %s2927_s21 }
0x1689   :  { %v1740_v27 = vpop.permute.xlu0 %1739 }
0x168a   :  { %v1742_v30 = vmul.f32 %v1740_v27, %v1736_v25 }
0x168c   :  { %1744 = vrot.lane.b32.xlu0 %v1742_v30, %s2927_s21 }
0x16fa   :  { %v1857_v14 = vpop.permute.xlu1 %1856 }
0x16fb   :  { %v1859_v32 = vadd.f32 %v1857_v14, %v1849_v31 }
0x16fd   :  { %2832 = vtanh.f32 %v1859_v32 }
0x16fe   :  { %v1745_v34 = vpop.permute.xlu0 %1744 }
0x16ff   :  { %v1747_v35 = vadd.f32 %v1745_v34, %v1737_v33 }
0x1701   :  { %2834 = vtanh.f32 %v1747_v35 }
0x1707   :  { %v2833_v17 = vpop.eup %2832 }
0x1708   :  { %1862 = vrot.lane.b32.xlu1 %v2833_v17, %s2919_s27 }
0x170b   :  { %v2835_v36 = vpop.eup %2834 }
0x170c   :  { %1750 = vrot.lane.b32.xlu0 %v2835_v36, %s2919_s27 }
0x177a   :  { %v1863_v37 = vpop.permute.xlu1 %1862 }
0x177b   :  { %v1865_v38 = vmul.f32 %v1863_v37, %v1848_v23 }
0x177d   :  { %1867 = vrot.lane.b32.xlu1 %v1865_v38, %s2927_s21 }
0x177e   :  { %v1751_v48 = vpop.permute.xlu0 %1750 }
0x177f   :  { %v1753_v40 = vmul.f32 %v1751_v48, %v1736_v25 }
0x1781   :  { %1871 = vrot.lane.b32.xlu0 %v1753_v40, %s2919_s27 }
0x17ef   :  { %v1868_v41 = vpop.permute.xlu1 %1867 }
0x17f0   :  { %1870 = vst.msk [vmem:[#allocation3] sm:$0xf] %vm332_vm8, %v1868_v41 }
0x17f3   :  { %v1872_v42 = vpop.permute.xlu0 %1871 }
0x17f4   :  { %1874 = vst.msk [vmem:[#allocation3] sm:$0xf] %vm334_vm9, %v1872_v42 }
0x17fb   :  { %v1875_v43 = vld [vmem:[#allocation3] sm:$0xf] }
0x17fc   :  { %2523 = vmatmul.mubr.msk.f32.vlgmr.msra.gmra.mrb[14].mxu0 %vm337_vm10, %v1875_v43 }
0x18cf   :  { %v1945_v44 = vpop.f32.mrb[14].mxu0 }
0x18d0   :  { %v1946_v46 = vadd.f32 %v2845_v45, %v1945_v44  ;;  %v2524_v47 = vpop.f32.mrb[15].mxu0 }
0x18d2   :  { %v2108_v49 = vmul.f32 -1.442695, %v1946_v46 }
0x18d4   :  { %2836 = vpow2.f32 %v2108_v49 }
0x18d5   :  { %2838 = vtanh.f32 %v1946_v46 }
0x18de   :  { %v2837_v50 = vpop.eup %2836 }
0x18df   :  { %v1953_v52 = vadd.f32 1.0, %v2837_v50  ;;  %v2839_v53 = vpop.eup %2838 }
0x18e1   :  { %2840 = vrcp.f32 %v1953_v52 }
0x18eb   :  { %v2841_v54 = vpop.eup %2840 }
0x18ec   :  { %v1956_v55 = vsel %vm3084_vm7, %v2839_v53, %v2841_v54 }
0x18ed   :  { %1959 = vrot.lane.b32.xlu1 %v1956_v55, %s2919_s27  ;;  %v1957_v63 = vmul.f32 %v1956_v55, %v1747_v35 }
0x195f   :  { %v1960_v58 = vpop.permute.xlu1 %1959 }
0x1960   :  { %v1962_v59 = vmul.f32 %v1960_v58, %v1956_v55 }
0x1962   :  { %1964 = vrot.lane.b32.xlu0 %v1962_v59, %s2927_s21 }
0x1966   :  { %437 = vrot.lane.b32.xlu0 %v3190_v2, %s2927_s21  ;;  %v2002_v2 = vsel %vm1986_vm13, 1, %v2929_v56 }
0x196a   :  { %875 = vrot.lane.b32.xlu0 %v3290_v39, %s2927_s21  ;;  %v2004_v39 = vsel %vm1988_vm14, 1, %v2929_v56 }
0x196e   :  { %1315 = vrot.lane.b32.xlu0 %v3390_v18, %s2927_s21 }
0x1972   :  { %1755 = vrot.lane.b32.xlu0 %v1753_v40, %s2927_s21 }
0x1976   :  { %2006 = vperm.xlu0 %2712, %v1997_v60  }
0x197a   :  { %2015 = vperm.xlu0 %2712, %v2000_v62  }
0x197e   :  { %2021 = vperm.xlu0 %2712, %v2002_v2  }
0x1982   :  { %2027 = vperm.xlu0 %2712, %v2004_v39  }
0x19d4   :  { %v1965_v3 = vpop.permute.xlu0 %1964 }
0x19d5   :  { %v1967_v4 = vadd.f32 %v1965_v3, %v1957_v63 }
0x19d7   :  { %2842 = vtanh.f32 %v1967_v4 }
0x19d8   :  { %v438_v5 = vpop.permute.xlu0 %437 }
0x19d9   :  { %440 = vst.msk [vmem:[#allocation9] sm:$0xf] %vm332_vm8, %v438_v5 }
0x19dc   :  { %v876_v18 = vpop.permute.xlu0 %875 }
0x19dd   :  { %879 = vst.msk [vmem:[#allocation9 + $0x8] sm:$0xf] %vm332_vm8, %v876_v18 }
0x19e0   :  { %v1316_v6 = vpop.permute.xlu0 %1315  ;;  %v1989_v10 = vld [vmem:[#allocation9] sm:$0xf] }
0x19e1   :  { %v2843_v1 = vpop.eup %2842  ;;  %1319 = vst.msk [vmem:[#allocation9 + $0x10] sm:$0xf] %vm332_vm8, %v1316_v6 }
0x19e2   :  { %1970 = vrot.lane.b32.xlu1 %v2843_v1, %s2919_s27 }
0x19e4   :  { %v1756_v7 = vpop.permute.xlu0 %1755  ;;  %v1991_v30 = vld [vmem:[#allocation9 + $0x8] sm:$0xf] }
0x19e5   :  { %1759 = vst.msk [vmem:[#allocation9 + $0x18] sm:$0xf] %vm332_vm8, %v1756_v7 }
0x19e6   :  { %655 = vrot.lane.b32.xlu1 %v3240_v51, %s2927_s21 }
0x19e8   :  { %v1993_v32 = vld [vmem:[#allocation9 + $0x10] sm:$0xf] }
0x19ea   :  { %1095 = vrot.lane.b32.xlu1 %v3340_v29, %s2927_s21 }
0x19ec   :  { %v1995_v38 = vld [vmem:[#allocation9 + $0x18] sm:$0xf] }
0x19ee   :  { %1535 = vrot.lane.b32.xlu1 %v3439_v61, %s2927_s21 }
0x19f2   :  { %2009 = vperm.xlu1 %2713, %v1998_v8  }
0x19f5   :  { %v2007_v12 = vpop.permute.xlu0 %2006 }
0x19f6   :  { %vm2029_vm2 = vcmp.eq.s32.totalorder %v2007_v12, 1  ;;  %2012 = vperm.xlu1 %2713, %v1999_v9  }
0x19f7   :  { %v2037_v13 = vsel %vm2029_vm2, %v1989_v10, 0.0 }
0x19f8   :  { %2045 = vst.msk [vmem:[#allocation9] sm:$0xf] %vm332_vm8, %v2037_v13 }
0x19f9   :  { %v2016_v0 = vpop.permute.xlu0 %2015 }
0x19fa   :  { %2018 = vperm.xlu1 %2713, %v2001_v15   ;;  %vm2032_vm4 = vcmp.eq.s32.totalorder %v2016_v0, 1 }
0x19fd   :  { %v2022_v21 = vpop.permute.xlu0 %2021 }
0x19fe   :  { %vm2034_vm5 = vcmp.eq.s32.totalorder %v2022_v21, 1 }
0x1a01   :  { %v2028_v35 = vpop.permute.xlu0 %2027 }
0x1a02   :  { %vm2036_vm10 = vcmp.eq.s32.totalorder %v2028_v35, 1 }
0x1a54   :  { %v1971_v51 = vpop.permute.xlu1 %1970 }
0x1a55   :  { %v1973_v29 = vmul.f32 %v1971_v51, %v1956_v55 }
0x1a57   :  { %1975 = vrot.lane.b32.xlu1 %v1973_v29, %s2927_s21  ;;  %s2890_s21 = scalar_lea.vmem %s2059_s6, 512 }
0x1a58   :  { %v656_v61 = vpop.permute.xlu1 %655  ;;  %p2891_p2 = scmp.ne.s32.totalorder %s2059_s6, %s2890_s21  ;;  %p2896_p4 = scmp.lt.s32.totalorder %s2890_s21, %s2890_s21 }
0x1a59   :  { %659 = vst.msk [vmem:[#allocation9 + $0x4] sm:$0xf] %vm332_vm8, %v656_v61 }
0x1a5a   :  { %p2897_p5 = por %p2896_p4, %p2895_p3 }
0x1a5b   :  { %2024 = vperm.xlu1 %2713, %v2003_v16  }
0x1a5c   :  { %v1096_v19 = vpop.permute.xlu1 %1095  ;;  %p2898_p6 = pnand %p2897_p5, %p2891_p2 }
0x1a5d   :  { %1099 = vst.msk [vmem:[#allocation9 + $0xc] sm:$0xf] %vm332_vm8, %v1096_v19 }
0x1a60   :  { %v1536_v20 = vpop.permute.xlu1 %1535  ;;  %v1990_v11 = vld [vmem:[#allocation9 + $0x4] sm:$0xf] }
0x1a61   :  { %1539 = vst.msk [vmem:[#allocation9 + $0x14] sm:$0xf] %vm332_vm8, %v1536_v20 }
0x1a64   :  { %v1992_v22 = vld [vmem:[#allocation9 + $0xc] sm:$0xf] }
0x1a65   :  { %v2040_v23 = vsel %vm2032_vm4, %v1992_v22, 0.0 }
0x1a66   :  { %2048 = vst.msk [vmem:[#allocation9 + $0xc] sm:$0xf] %vm332_vm8, %v2040_v23 }
0x1a68   :  { %v1994_v24 = vld [vmem:[#allocation9 + $0x14] sm:$0xf] }
0x1a69   :  { %v2042_v28 = vsel %vm2034_vm5, %v1994_v24, 0.0 }
0x1a6a   :  { %2050 = vst.msk [vmem:[#allocation9 + $0x14] sm:$0xf] %vm332_vm8, %v2042_v28 }
0x1a71   :  { %v2010_v25 = vpop.permute.xlu1 %2009 }
0x1a72   :  { %vm2030_vm6 = vcmp.eq.s32.totalorder %v2010_v25, 1 }
0x1a73   :  { %v2038_v26 = vsel %vm2030_vm6, %v1990_v11, 0.0 }
0x1a74   :  { %2046 = vst.msk [vmem:[#allocation9 + $0x4] sm:$0xf] %vm332_vm8, %v2038_v26 }
0x1a75   :  { %v2013_v27 = vpop.permute.xlu1 %2012 }
0x1a76   :  { %vm2031_vm7 = vcmp.eq.s32.totalorder %v2013_v27, 1 }
0x1a77   :  { %v2039_v31 = vsel %vm2031_vm7, %v1991_v30, 0.0 }
0x1a78   :  { %2047 = vst.msk [vmem:[#allocation9 + $0x8] sm:$0xf] %vm332_vm8, %v2039_v31 }
0x1a79   :  { %v2019_v14 = vpop.permute.xlu1 %2018 }
0x1a7a   :  { %vm2033_vm9 = vcmp.eq.s32.totalorder %v2019_v14, 1 }
0x1a7b   :  { %v2041_v33 = vsel %vm2033_vm9, %v1993_v32, 0.0 }
0x1a7c   :  { %2049 = vst.msk [vmem:[#allocation9 + $0x10] sm:$0xf] %vm332_vm8, %v2041_v33 }
0x1ac9   :  { %v1976_v34 = vpop.permute.xlu1 %1975 }
0x1aca   :  { %1979 = vst.msk [vmem:[#allocation9 + $0x1c] sm:$0xf] %vm332_vm8, %v1976_v34 }
0x1ad1   :  { %v1996_v17 = vld [vmem:[#allocation9 + $0x1c] sm:$0xf] }
0x1ad2   :  { %v2044_v36 = vsel %vm2036_vm10, %v1996_v17, 0.0 }
0x1ad3   :  { %2052 = vst.msk [vmem:[#allocation9 + $0x1c] sm:$0xf] %vm332_vm8, %v2044_v36 }
0x1ada   :  { %v2025_v37 = vpop.permute.xlu1 %2024 }
0x1adb   :  { %vm2035_vm11 = vcmp.eq.s32.totalorder %v2025_v37, 1 }
0x1adc   :  { %v2043_v48 = vsel %vm2035_vm11, %v1995_v38, 0.0 }
0x1add   :  { %2051 = vst.msk [vmem:[#allocation9 + $0x18] sm:$0xf] %vm332_vm8, %v2043_v48 }
0x1ade   :  { %2901 = shalt.err (!%p2898_p6)
}
0x1adf   :  { %s2902_s18 = scalar_lea.hbm %s3545_s11, 512 }
0x1ae0   :  { %p2903_p7 = scmp.ne.s32.totalorder %s3545_s11, %s2902_s18  ;;  %p2906_p8 = scmp.lt.u32.totalorder %s2902_s18, %s3545_s11 }
0x1ae2   :  { %p2908_p9 = pnand %p2906_p8, %p2903_p7 }
0x1ae4   :  { %2911 = shalt.err (!%p2908_p9)
}
0x1ae5   :  { %2064 = dma.vmem_to_hbm [thread:$0]  %s2059_s6, 512, %s3545_s11, [#allocation6], %s2919_s27, %s2919_s27, %s2920_s28  }
0x1ae6   :  { %2916 = dma.done.wait [#allocation6], 512  }
0x1ae7   :  { %2917 = vsyncadd [#allocation6], 4294966784 }
0x1ae8   :  { %2068 = vsyncpa [#allocation5], 1 }
0x1ae9   :  { %2069 = vsyncpa [#allocation8], 1 }
0x1aea   :  { %2070 = vsyncpa [#allocation6], 1 }

</bundles_post_ra>
